<compile_context>
chip_gen: v5e
topology: v5e:2x2
jax: 0.10.0
libtpu: 0.0.40
codegen_flags: <defaults>
</compile_context>

<pallas_src>
import math
import functools

import jax
import jax.numpy as jnp
from jax.experimental import pallas as pl
from jax.experimental.pallas import tpu as pltpu


# ----------------------------- kernel helpers -------------------------------

def _layernorm(x, w, b, eps=1e-5):
    # matches F.layer_norm over the last dim (biased variance), eps=1e-5
    mu = jnp.mean(x, axis=-1, keepdims=True)
    var = jnp.mean((x - mu) ** 2, axis=-1, keepdims=True)
    return (x - mu) * jax.lax.rsqrt(var + eps) * w + b


def _gelu_exact(x):
    # PyTorch nn.GELU() default is the exact erf formulation.
    return 0.5 * x * (1.0 + jax.lax.erf(x * (1.0 / math.sqrt(2.0))))


def _mm(a, w_ref, b_vec):
    # Matmul against a resident weight ref; left operand is cast to the weight
    # dtype (bf16 by default), accumulate in f32, bias added in f32.
    return jnp.dot(a.astype(w_ref.dtype), w_ref[...],
                   preferred_element_type=jnp.float32) + b_vec


# --------------------------------- kernel -----------------------------------

def encoder_block_kernel(n_head, heads_per_group, approx_gelu,
                         x_ref,
                         ln1w_ref, ln1b_ref,
                         wqkv_ref, bqkv_ref,
                         wpr_ref, bpr_ref,
                         ln2w_ref, ln2b_ref,
                         wfc_ref, bfc_ref,
                         wp2_ref, bp2_ref,
                         out_ref,
                         y_scratch):
    bt, T, C = x_ref.shape                 # block shape (static)
    hd = C // n_head
    M = bt * T
    g = heads_per_group
    gw = g * hd                            # merged width of one head group
    mm_dtype = wqkv_ref.dtype              # MXU operand dtype (bf16 default)

    # Fold the batch tile into the matmul M-dimension (T % 8 == 0 when bt > 1,
    # enforced by the wrapper, so this reshape is layout-preserving).
    x = x_ref[...].reshape(M, C)           # (M, C), f32

    # ---------------- attention branch: x + Attn(LN1(x)) ----------------
    h = _layernorm(x, ln1w_ref[0], ln1b_ref[0])              # (M, C) f32
    qkv = _mm(h, wqkv_ref, bqkv_ref[0])                      # (M, 3C) f32

    # Fold 1/sqrt(hd) into q (O(M*C) instead of O(T*T) per head), then cast
    # q/k/v once to the MXU dtype so both attention einsums run on the native
    # bf16 MXU path with f32 accumulation.
    q = (qkv[:, 0 * C:1 * C] * (1.0 / math.sqrt(hd))).astype(mm_dtype)
    k = qkv[:, 1 * C:2 * C].astype(mm_dtype)
    v = qkv[:, 2 * C:3 * C].astype(mm_dtype)

    # Static head loop, grouped so every y_scratch store is gw lanes wide
    # (gw targets 128 -> unmasked vst instead of masked partial stores).
    # TODO(synk): flash-style KV tiling inside this loop for T >~ 1-2k so the
    #             (T, T) score matrix never materializes (v7x 64 MiB VMEM).
    # TODO(synk): convert to lax.fori_loop + pl.ds head slices for very large
    #             n_head to bound vreg live ranges.
    for gi in range(n_head // g):
        outs = []
        for hj in range(g):
            hh = gi * g + hj
            lo, hi = hh * hd, (hh + 1) * hd
            qh = q[:, lo:hi].reshape(bt, T, hd)
            kh = k[:, lo:hi].reshape(bt, T, hd)
            vh = v[:, lo:hi].reshape(bt, T, hd)

            s = jnp.einsum('bqd,bkd->bqk', qh, kh,
                           preferred_element_type=jnp.float32)   # (bt, T, T)
            s = s - jnp.max(s, axis=-1, keepdims=True)
            p = jnp.exp(s)
            denom = jnp.sum(p, axis=-1, keepdims=True)            # (bt, T, 1)
            p = p * pl.reciprocal(denom, approx=True)             # EUP recip

            yh = jnp.einsum('bqk,bkd->bqd', p.astype(mm_dtype), vh,
                            preferred_element_type=jnp.float32)   # (bt, T, hd)
            outs.append(yh.reshape(M, hd))

        blockw = outs[0] if g == 1 else jnp.concatenate(outs, axis=-1)
        y_scratch[:, gi * gw:(gi + 1) * gw] = blockw               # lane-dense

    attn_out = _mm(y_scratch[...], wpr_ref, bpr_ref[0])           # (M, C) f32
    x1 = x + attn_out                                             # residual 1

    # ------------------- MLP branch: x1 + MLP(LN2(x1)) -------------------
    h2 = _layernorm(x1, ln2w_ref[0], ln2b_ref[0])
    pre = _mm(h2, wfc_ref, bfc_ref[0])                            # (M, 4C) f32
    h3 = jax.nn.gelu(pre, approximate=True) if approx_gelu else _gelu_exact(pre)
    mlp_out = _mm(h3, wp2_ref, bp2_ref[0])                        # (M, C) f32

    out_ref[...] = (x1 + mlp_out).reshape(bt, T, C).astype(out_ref.dtype)


# -------------------------------- wrapper ------------------------------------

def encoder_block(x, params, n_head, *,
                  block_b=None,
                  matmul_dtype=jnp.bfloat16,
                  approx_gelu=False,
                  m_target=512,
                  min_grid_steps=2,
                  vmem_limit_bytes=None,
                  single_buffer_weights=True):
    """Fused pre-LN encoder block.

    matmul_dtype:   dtype of the MXU operands (weights + attention einsum
                    operands).  Default bf16 (f32 accumulation / element-wise
                    math preserved).  Pass jnp.float32 or None for exact
                    PyTorch-parity mode.
    block_b:        batch rows folded per grid step (None = auto: largest
                    divisor of B with block_b*T <= m_target that still leaves
                    >= min_grid_steps grid steps for v7x's two TensorCores).
    approx_gelu:    use tanh GELU (EUP) instead of exact erf (PyTorch default).
    """
    B, T, C = x.shape
    assert C % n_head == 0
    hd = C // n_head
    (ln1w, ln1b, wqkv, bqkv, wpr, bpr,
     ln2w, ln2b, wfc, bfc, wp2, bp2) = params

    if matmul_dtype is not None:
        wqkv = wqkv.astype(matmul_dtype)
        wpr = wpr.astype(matmul_dtype)
        wfc = wfc.astype(matmul_dtype)
        wp2 = wp2.astype(matmul_dtype)

    # Head grouping: merged group width targets 128 lanes (e.g. 2 heads for
    # hd=64) so scratch stores are unmasked.
    heads_per_group = 1
    if hd < 128:
        for gg in range(1, n_head + 1):
            if n_head % gg == 0 and gg * hd <= 128:
                heads_per_group = gg

    # Batch folding, keeping >= min_grid_steps steps when B allows (v7x: 2 TCs
    # can only split a "parallel" axis with >= 2 grid steps).
    if block_b is None:
        block_b = 1
        if T % 8 == 0:
            for d in range(1, B + 1):
                if B % d != 0 or d * T > m_target:
                    continue
                if d > 1 and (B // d) < min_grid_steps:
                    continue
                block_b = max(block_b, d)
    assert B % block_b == 0
    if block_b > 1:
        assert T % 8 == 0

    # VMEM limit derived from the actual chip (v5e/v6e: 128 MiB, v7x: 64 MiB).
    if vmem_limit_bytes is None:
        cap = 64 * 1024 * 1024
        try:
            cap = int(getattr(pltpu.get_tpu_info(), "vmem_capacity_bytes", cap))
        except Exception:
            pass
        vmem_limit_bytes = min(int(cap * 0.8), 100 * 1024 * 1024)

    grid = (B // block_b,)

    def build_specs(use_single_buffer):
        def fixed(shape):
            idx = lambda b: (0,) * len(shape)
            if use_single_buffer:
                try:
                    # Constant index_map -> weights stay resident; no need for
                    # a second pipeline buffer (pure VMEM waste otherwise).
                    return pl.BlockSpec(shape, idx, pipeline_mode=pl.Buffered(1))
                except Exception:
                    pass
            return pl.BlockSpec(shape, idx)

        in_specs = [
            pl.BlockSpec((block_b, T, C), lambda b: (b, 0, 0)),   # x
            fixed((1, C)), fixed((1, C)),                         # ln1 w, b
            fixed((C, 3 * C)), fixed((1, 3 * C)),                 # c_attn W, b
            fixed((C, C)), fixed((1, C)),                         # attn c_proj
            fixed((1, C)), fixed((1, C)),                         # ln2 w, b
            fixed((C, 4 * C)), fixed((1, 4 * C)),                 # mlp c_fc
            fixed((4 * C, C)), fixed((1, C)),                     # mlp c_proj
        ]
        return in_specs

    kernel = functools.partial(encoder_block_kernel,
                               n_head, heads_per_group, approx_gelu)

    def run(use_single_buffer):
        return pl.pallas_call(
            kernel,
            out_shape=jax.ShapeDtypeStruct((B, T, C), x.dtype),
            grid=grid,
            in_specs=build_specs(use_single_buffer),
            out_specs=pl.BlockSpec((block_b, T, C), lambda b: (b, 0, 0)),
            # merged-head attention output accumulator
            scratch_shapes=[pltpu.VMEM((block_b * T, C), jnp.float32)],
            compiler_params=pltpu.CompilerParams(
                dimension_semantics=("parallel",),
                vmem_limit_bytes=vmem_limit_bytes,
            ),
        )(x, ln1w, ln1b, wqkv, bqkv, wpr, bpr, ln2w, ln2b, wfc, bfc, wp2, bp2)

    if single_buffer_weights:
        try:
            return run(True)
        except Exception:
            # Fall back to default double-buffered weight specs if this JAX
            # build rejects Buffered(1) pipeline mode.
            return run(False)
    return run(False)


# --------------------------- pure-JAX reference -------------------------------

def encoder_block_ref(x, params, n_head):
    (ln1w, ln1b, wqkv, bqkv, wpr, bpr,
     ln2w, ln2b, wfc, bfc, wp2, bp2) = params
    B, T, C = x.shape
    hd = C // n_head

    h = _layernorm(x, ln1w[0], ln1b[0])
    qkv = h @ wqkv + bqkv[0]
    q, k, v = jnp.split(qkv, 3, axis=-1)
    q = q.reshape(B, T, n_head, hd).transpose(0, 2, 1, 3)
    k = k.reshape(B, T, n_head, hd).transpose(0, 2, 1, 3)
    v = v.reshape(B, T, n_head, hd).transpose(0, 2, 1, 3)
    att = jnp.einsum("bhqd,bhkd->bhqk", q, k) / math.sqrt(hd)
    att = jax.nn.softmax(att, axis=-1)
    y = jnp.einsum("bhqk,bhkd->bhqd", att, v)
    y = y.transpose(0, 2, 1, 3).reshape(B, T, C)
    x1 = x + (y @ wpr + bpr[0])

    h2 = _layernorm(x1, ln2w[0], ln2b[0])
    h3 = _gelu_exact(h2 @ wfc + bfc[0])
    return x1 + (h3 @ wp2 + bp2[0])


# ---------------------------------- main -------------------------------------

if __name__ == "__main__":
    B, T, C, n_head = 2, 8, 32, 4
    key = jax.random.PRNGKey(0)
    keys = jax.random.split(key, 16)

    def nrm(k, shape, s=0.02):
        return (s * jax.random.normal(k, shape)).astype(jnp.float32)

    # parameters (LayerNorm at PyTorch init: ones / zeros)
    ln1w = jnp.ones((1, C), jnp.float32)
    ln1b = jnp.zeros((1, C), jnp.float32)
    ln2w = jnp.ones((1, C), jnp.float32)
    ln2b = jnp.zeros((1, C), jnp.float32)
    wqkv = nrm(keys[0], (C, 3 * C))
    bqkv = nrm(keys[1], (1, 3 * C))
    wpr  = nrm(keys[2], (C, C))
    bpr  = nrm(keys[3], (1, C))
    wfc  = nrm(keys[4], (C, 4 * C))
    bfc  = nrm(keys[5], (1, 4 * C))
    wp2  = nrm(keys[6], (4 * C, C))
    bp2  = nrm(keys[7], (1, C))

    params = (ln1w, ln1b, wqkv, bqkv, wpr, bpr, ln2w, ln2b, wfc, bfc, wp2, bp2)

    x = jax.random.normal(keys[8], (B, T, C), dtype=jnp.float32)

    ref = encoder_block_ref(x, params, n_head)

    # 1) Exact-parity mode: f32 matmuls, exact erf GELU (matches PyTorch fwd).
    out_f32 = jax.block_until_ready(
        encoder_block(x, params, n_head, matmul_dtype=jnp.float32))
    assert out_f32.shape == (B, T, C)
    err = jnp.max(jnp.abs(out_f32 - ref))
    assert jnp.allclose(out_f32, ref, atol=1e-4, rtol=1e-4), \
        f"f32 mode mismatch vs JAX reference, max abs err {err}"

    # 2) Default perf mode: bf16 MXU operands, f32 accumulation / elementwise.
    out_bf16 = jax.block_until_ready(encoder_block(x, params, n_head))
    err_bf = jnp.max(jnp.abs(out_bf16 - ref))
    assert jnp.allclose(out_bf16, ref, atol=2e-2, rtol=2e-2), \
        f"bf16 mode mismatch vs JAX reference, max abs err {err_bf}"

    print("KERNEL_OK")
</pallas_src>

<mosaic_0001>
module attributes {stable_mosaic.version = 11 : i64} {
  func.func @encoder_block_kernel(%arg0: i32, %arg1: memref<1x8x32xf32, #tpu.memory_space<vmem>>, %arg2: memref<1x32xf32, #tpu.memory_space<vmem>>, %arg3: memref<1x32xf32, #tpu.memory_space<vmem>>, %arg4: memref<32x96xf32, #tpu.memory_space<vmem>>, %arg5: memref<1x96xf32, #tpu.memory_space<vmem>>, %arg6: memref<32x32xf32, #tpu.memory_space<vmem>>, %arg7: memref<1x32xf32, #tpu.memory_space<vmem>>, %arg8: memref<1x32xf32, #tpu.memory_space<vmem>>, %arg9: memref<1x32xf32, #tpu.memory_space<vmem>>, %arg10: memref<32x128xf32, #tpu.memory_space<vmem>>, %arg11: memref<1x128xf32, #tpu.memory_space<vmem>>, %arg12: memref<128x32xf32, #tpu.memory_space<vmem>>, %arg13: memref<1x32xf32, #tpu.memory_space<vmem>>, %arg14: memref<1x8x32xf32, #tpu.memory_space<vmem>>, %arg15: memref<8x32xf32, #tpu.memory_space<vmem>>) attributes {dimension_semantics = [#tpu.dimension_semantics<parallel>], iteration_bounds = array<i64: 2>, scalar_prefetch = 0 : i64, scratch_operands = 1 : i64, tpu.core_type = #tpu.core_type<tc>, window_params = [{transform_indices = @transform_0, window_bounds = array<i64: 1, 8, 32>}, {pipeline_mode = #tpu.pipeline_mode<synchronous>, transform_indices = @transform_1, window_bounds = array<i64: 1, 32>}, {pipeline_mode = #tpu.pipeline_mode<synchronous>, transform_indices = @transform_2, window_bounds = array<i64: 1, 32>}, {pipeline_mode = #tpu.pipeline_mode<synchronous>, transform_indices = @transform_3, window_bounds = array<i64: 32, 96>}, {pipeline_mode = #tpu.pipeline_mode<synchronous>, transform_indices = @transform_4, window_bounds = array<i64: 1, 96>}, {pipeline_mode = #tpu.pipeline_mode<synchronous>, transform_indices = @transform_5, window_bounds = array<i64: 32, 32>}, {pipeline_mode = #tpu.pipeline_mode<synchronous>, transform_indices = @transform_6, window_bounds = array<i64: 1, 32>}, {pipeline_mode = #tpu.pipeline_mode<synchronous>, transform_indices = @transform_7, window_bounds = array<i64: 1, 32>}, {pipeline_mode = #tpu.pipeline_mode<synchronous>, transform_indices = @transform_8, window_bounds = array<i64: 1, 32>}, {pipeline_mode = #tpu.pipeline_mode<synchronous>, transform_indices = @transform_9, window_bounds = array<i64: 32, 128>}, {pipeline_mode = #tpu.pipeline_mode<synchronous>, transform_indices = @transform_10, window_bounds = array<i64: 1, 128>}, {pipeline_mode = #tpu.pipeline_mode<synchronous>, transform_indices = @transform_11, window_bounds = array<i64: 128, 32>}, {pipeline_mode = #tpu.pipeline_mode<synchronous>, transform_indices = @transform_12, window_bounds = array<i64: 1, 32>}, {transform_indices = @transform_13, window_bounds = array<i64: 1, 8, 32>}]} {
    %c0 = arith.constant 0 : index
    %c0_0 = arith.constant 0 : index
    %c0_1 = arith.constant 0 : index
    %0 = vector.load %arg1[%c0, %c0_0, %c0_1] : memref<1x8x32xf32, #tpu.memory_space<vmem>>, vector<1x8x32xf32>
    %1 = vector.shape_cast %0 : vector<1x8x32xf32> to vector<8x32xf32>
    %c0_2 = arith.constant 0 : index
    %c0_3 = arith.constant 0 : index
    %2 = vector.load %arg2[%c0_2, %c0_3] : memref<1x32xf32, #tpu.memory_space<vmem>>, vector<1x32xf32>
    %3 = vector.shape_cast %2 : vector<1x32xf32> to vector<32xf32>
    %c0_4 = arith.constant 0 : index
    %c0_5 = arith.constant 0 : index
    %4 = vector.load %arg3[%c0_4, %c0_5] : memref<1x32xf32, #tpu.memory_space<vmem>>, vector<1x32xf32>
    %5 = vector.shape_cast %4 : vector<1x32xf32> to vector<32xf32>
    %cst = arith.constant dense<0.000000e+00> : vector<8xf32>
    %6 = vector.multi_reduction <add>, %1, %cst [1] : vector<8x32xf32> to vector<8xf32>
    %7 = vector.shape_cast %6 : vector<8xf32> to vector<8x1xf32>
    %cst_6 = arith.constant 3.200000e+01 : f32
    %8 = vector.broadcast %cst_6 : f32 to vector<8x1xf32>
    %9 = arith.divf %7, %8 : vector<8x1xf32>
    %10 = vector.broadcast %9 : vector<8x1xf32> to vector<8x32xf32>
    %11 = arith.subf %1, %10 : vector<8x32xf32>
    %12 = arith.mulf %11, %11 : vector<8x32xf32>
    %cst_7 = arith.constant dense<0.000000e+00> : vector<8xf32>
    %13 = vector.multi_reduction <add>, %12, %cst_7 [1] : vector<8x32xf32> to vector<8xf32>
    %14 = vector.shape_cast %13 : vector<8xf32> to vector<8x1xf32>
    %cst_8 = arith.constant 3.200000e+01 : f32
    %15 = vector.broadcast %cst_8 : f32 to vector<8x1xf32>
    %16 = arith.divf %14, %15 : vector<8x1xf32>
    %17 = vector.broadcast %9 : vector<8x1xf32> to vector<8x32xf32>
    %18 = arith.subf %1, %17 : vector<8x32xf32>
    %cst_9 = arith.constant 9.99999974E-6 : f32
    %19 = vector.broadcast %cst_9 : f32 to vector<8x1xf32>
    %20 = arith.addf %16, %19 : vector<8x1xf32>
    %21 = math.rsqrt %20 : vector<8x1xf32>
    %22 = vector.broadcast %21 : vector<8x1xf32> to vector<8x32xf32>
    %23 = arith.mulf %18, %22 : vector<8x32xf32>
    %24 = vector.shape_cast %3 : vector<32xf32> to vector<1x32xf32>
    %25 = vector.broadcast %24 : vector<1x32xf32> to vector<8x32xf32>
    %26 = arith.mulf %23, %25 : vector<8x32xf32>
    %27 = vector.shape_cast %5 : vector<32xf32> to vector<1x32xf32>
    %28 = vector.broadcast %27 : vector<1x32xf32> to vector<8x32xf32>
    %29 = arith.addf %26, %28 : vector<8x32xf32>
    %c0_10 = arith.constant 0 : index
    %c0_11 = arith.constant 0 : index
    %30 = vector.load %arg5[%c0_10, %c0_11] : memref<1x96xf32, #tpu.memory_space<vmem>>, vector<1x96xf32>
    %31 = vector.shape_cast %30 : vector<1x96xf32> to vector<96xf32>
    %c0_12 = arith.constant 0 : index
    %c0_13 = arith.constant 0 : index
    %32 = vector.load %arg4[%c0_12, %c0_13] : memref<32x96xf32, #tpu.memory_space<vmem>>, vector<32x96xf32>
    %cst_14 = arith.constant dense<0.000000e+00> : vector<8x96xf32>
    %33 = tpu.matmul %29, %32, %cst_14 {dimension_numbers = #tpu.dot_dimension_numbers<[1], [0], [0], [1], [0, 0, 1, 1], [], []>} : vector<8x32xf32>, vector<32x96xf32>, vector<8x96xf32> -> vector<8x96xf32>
    %34 = vector.shape_cast %31 : vector<96xf32> to vector<1x96xf32>
    %35 = vector.broadcast %34 : vector<1x96xf32> to vector<8x96xf32>
    %36 = arith.addf %33, %35 : vector<8x96xf32>
    %37 = vector.extract_strided_slice %36 {offsets = [0, 0], sizes = [8, 32], strides = [1, 1]} : vector<8x96xf32> to vector<8x32xf32>
    %cst_15 = arith.constant 0.353553385 : f32
    %38 = vector.broadcast %cst_15 : f32 to vector<8x32xf32>
    %39 = arith.mulf %37, %38 : vector<8x32xf32>
    %40 = vector.extract_strided_slice %36 {offsets = [0, 32], sizes = [8, 32], strides = [1, 1]} : vector<8x96xf32> to vector<8x32xf32>
    %41 = vector.extract_strided_slice %36 {offsets = [0, 64], sizes = [8, 32], strides = [1, 1]} : vector<8x96xf32> to vector<8x32xf32>
    %42 = vector.extract_strided_slice %39 {offsets = [0, 0], sizes = [8, 8], strides = [1, 1]} : vector<8x32xf32> to vector<8x8xf32>
    %43 = vector.shape_cast %42 : vector<8x8xf32> to vector<1x8x8xf32>
    %44 = vector.extract_strided_slice %40 {offsets = [0, 0], sizes = [8, 8], strides = [1, 1]} : vector<8x32xf32> to vector<8x8xf32>
    %45 = vector.shape_cast %44 : vector<8x8xf32> to vector<1x8x8xf32>
    %46 = vector.extract_strided_slice %41 {offsets = [0, 0], sizes = [8, 8], strides = [1, 1]} : vector<8x32xf32> to vector<8x8xf32>
    %47 = vector.shape_cast %46 : vector<8x8xf32> to vector<1x8x8xf32>
    "tpu.trace_start"() <{level = 10 : i32, message = "bqd,bkd->bqk"}> : () -> ()
    %cst_16 = arith.constant dense<0.000000e+00> : vector<1x8x8xf32>
    %48 = tpu.matmul %43, %45, %cst_16 {dimension_numbers = #tpu.dot_dimension_numbers<[2], [2], [1], [1], [0, 0, 0, 1, 1, 1], [0], [0]>} : vector<1x8x8xf32>, vector<1x8x8xf32>, vector<1x8x8xf32> -> vector<1x8x8xf32>
    "tpu.trace_stop"() : () -> ()
    %cst_17 = arith.constant dense<0xFF800000> : vector<1x8xf32>
    %49 = vector.multi_reduction <maximumf>, %48, %cst_17 [2] : vector<1x8x8xf32> to vector<1x8xf32>
    %50 = vector.shape_cast %49 : vector<1x8xf32> to vector<1x8x1xf32>
    %51 = vector.broadcast %50 : vector<1x8x1xf32> to vector<1x8x8xf32>
    %52 = arith.subf %48, %51 : vector<1x8x8xf32>
    %53 = math.exp %52 : vector<1x8x8xf32>
    %cst_18 = arith.constant dense<0.000000e+00> : vector<1x8xf32>
    %54 = vector.multi_reduction <add>, %53, %cst_18 [2] : vector<1x8x8xf32> to vector<1x8xf32>
    %55 = vector.shape_cast %54 : vector<1x8xf32> to vector<1x8x1xf32>
    %56 = tpu.reciprocal %55 {approx = true} : vector<1x8x1xf32> -> vector<1x8x1xf32>
    %57 = vector.broadcast %56 : vector<1x8x1xf32> to vector<1x8x8xf32>
    %58 = arith.mulf %53, %57 : vector<1x8x8xf32>
    "tpu.trace_start"() <{level = 10 : i32, message = "bqk,bkd->bqd"}> : () -> ()
    %cst_19 = arith.constant dense<0.000000e+00> : vector<1x8x8xf32>
    %59 = tpu.matmul %58, %47, %cst_19 {dimension_numbers = #tpu.dot_dimension_numbers<[2], [1], [1], [2], [0, 0, 0, 1, 1, 2], [0], [0]>} : vector<1x8x8xf32>, vector<1x8x8xf32>, vector<1x8x8xf32> -> vector<1x8x8xf32>
    "tpu.trace_stop"() : () -> ()
    %60 = vector.shape_cast %59 : vector<1x8x8xf32> to vector<8x8xf32>
    %61 = vector.extract_strided_slice %39 {offsets = [0, 8], sizes = [8, 8], strides = [1, 1]} : vector<8x32xf32> to vector<8x8xf32>
    %62 = vector.shape_cast %61 : vector<8x8xf32> to vector<1x8x8xf32>
    %63 = vector.extract_strided_slice %40 {offsets = [0, 8], sizes = [8, 8], strides = [1, 1]} : vector<8x32xf32> to vector<8x8xf32>
    %64 = vector.shape_cast %63 : vector<8x8xf32> to vector<1x8x8xf32>
    %65 = vector.extract_strided_slice %41 {offsets = [0, 8], sizes = [8, 8], strides = [1, 1]} : vector<8x32xf32> to vector<8x8xf32>
    %66 = vector.shape_cast %65 : vector<8x8xf32> to vector<1x8x8xf32>
    "tpu.trace_start"() <{level = 10 : i32, message = "bqd,bkd->bqk"}> : () -> ()
    %cst_20 = arith.constant dense<0.000000e+00> : vector<1x8x8xf32>
    %67 = tpu.matmul %62, %64, %cst_20 {dimension_numbers = #tpu.dot_dimension_numbers<[2], [2], [1], [1], [0, 0, 0, 1, 1, 1], [0], [0]>} : vector<1x8x8xf32>, vector<1x8x8xf32>, vector<1x8x8xf32> -> vector<1x8x8xf32>
    "tpu.trace_stop"() : () -> ()
    %cst_21 = arith.constant dense<0xFF800000> : vector<1x8xf32>
    %68 = vector.multi_reduction <maximumf>, %67, %cst_21 [2] : vector<1x8x8xf32> to vector<1x8xf32>
    %69 = vector.shape_cast %68 : vector<1x8xf32> to vector<1x8x1xf32>
    %70 = vector.broadcast %69 : vector<1x8x1xf32> to vector<1x8x8xf32>
    %71 = arith.subf %67, %70 : vector<1x8x8xf32>
    %72 = math.exp %71 : vector<1x8x8xf32>
    %cst_22 = arith.constant dense<0.000000e+00> : vector<1x8xf32>
    %73 = vector.multi_reduction <add>, %72, %cst_22 [2] : vector<1x8x8xf32> to vector<1x8xf32>
    %74 = vector.shape_cast %73 : vector<1x8xf32> to vector<1x8x1xf32>
    %75 = tpu.reciprocal %74 {approx = true} : vector<1x8x1xf32> -> vector<1x8x1xf32>
    %76 = vector.broadcast %75 : vector<1x8x1xf32> to vector<1x8x8xf32>
    %77 = arith.mulf %72, %76 : vector<1x8x8xf32>
    "tpu.trace_start"() <{level = 10 : i32, message = "bqk,bkd->bqd"}> : () -> ()
    %cst_23 = arith.constant dense<0.000000e+00> : vector<1x8x8xf32>
    %78 = tpu.matmul %77, %66, %cst_23 {dimension_numbers = #tpu.dot_dimension_numbers<[2], [1], [1], [2], [0, 0, 0, 1, 1, 2], [0], [0]>} : vector<1x8x8xf32>, vector<1x8x8xf32>, vector<1x8x8xf32> -> vector<1x8x8xf32>
    "tpu.trace_stop"() : () -> ()
    %79 = vector.shape_cast %78 : vector<1x8x8xf32> to vector<8x8xf32>
    %80 = vector.extract_strided_slice %39 {offsets = [0, 16], sizes = [8, 8], strides = [1, 1]} : vector<8x32xf32> to vector<8x8xf32>
    %81 = vector.shape_cast %80 : vector<8x8xf32> to vector<1x8x8xf32>
    %82 = vector.extract_strided_slice %40 {offsets = [0, 16], sizes = [8, 8], strides = [1, 1]} : vector<8x32xf32> to vector<8x8xf32>
    %83 = vector.shape_cast %82 : vector<8x8xf32> to vector<1x8x8xf32>
    %84 = vector.extract_strided_slice %41 {offsets = [0, 16], sizes = [8, 8], strides = [1, 1]} : vector<8x32xf32> to vector<8x8xf32>
    %85 = vector.shape_cast %84 : vector<8x8xf32> to vector<1x8x8xf32>
    "tpu.trace_start"() <{level = 10 : i32, message = "bqd,bkd->bqk"}> : () -> ()
    %cst_24 = arith.constant dense<0.000000e+00> : vector<1x8x8xf32>
    %86 = tpu.matmul %81, %83, %cst_24 {dimension_numbers = #tpu.dot_dimension_numbers<[2], [2], [1], [1], [0, 0, 0, 1, 1, 1], [0], [0]>} : vector<1x8x8xf32>, vector<1x8x8xf32>, vector<1x8x8xf32> -> vector<1x8x8xf32>
    "tpu.trace_stop"() : () -> ()
    %cst_25 = arith.constant dense<0xFF800000> : vector<1x8xf32>
    %87 = vector.multi_reduction <maximumf>, %86, %cst_25 [2] : vector<1x8x8xf32> to vector<1x8xf32>
    %88 = vector.shape_cast %87 : vector<1x8xf32> to vector<1x8x1xf32>
    %89 = vector.broadcast %88 : vector<1x8x1xf32> to vector<1x8x8xf32>
    %90 = arith.subf %86, %89 : vector<1x8x8xf32>
    %91 = math.exp %90 : vector<1x8x8xf32>
    %cst_26 = arith.constant dense<0.000000e+00> : vector<1x8xf32>
    %92 = vector.multi_reduction <add>, %91, %cst_26 [2] : vector<1x8x8xf32> to vector<1x8xf32>
    %93 = vector.shape_cast %92 : vector<1x8xf32> to vector<1x8x1xf32>
    %94 = tpu.reciprocal %93 {approx = true} : vector<1x8x1xf32> -> vector<1x8x1xf32>
    %95 = vector.broadcast %94 : vector<1x8x1xf32> to vector<1x8x8xf32>
    %96 = arith.mulf %91, %95 : vector<1x8x8xf32>
    "tpu.trace_start"() <{level = 10 : i32, message = "bqk,bkd->bqd"}> : () -> ()
    %cst_27 = arith.constant dense<0.000000e+00> : vector<1x8x8xf32>
    %97 = tpu.matmul %96, %85, %cst_27 {dimension_numbers = #tpu.dot_dimension_numbers<[2], [1], [1], [2], [0, 0, 0, 1, 1, 2], [0], [0]>} : vector<1x8x8xf32>, vector<1x8x8xf32>, vector<1x8x8xf32> -> vector<1x8x8xf32>
    "tpu.trace_stop"() : () -> ()
    %98 = vector.shape_cast %97 : vector<1x8x8xf32> to vector<8x8xf32>
    %99 = vector.extract_strided_slice %39 {offsets = [0, 24], sizes = [8, 8], strides = [1, 1]} : vector<8x32xf32> to vector<8x8xf32>
    %100 = vector.shape_cast %99 : vector<8x8xf32> to vector<1x8x8xf32>
    %101 = vector.extract_strided_slice %40 {offsets = [0, 24], sizes = [8, 8], strides = [1, 1]} : vector<8x32xf32> to vector<8x8xf32>
    %102 = vector.shape_cast %101 : vector<8x8xf32> to vector<1x8x8xf32>
    %103 = vector.extract_strided_slice %41 {offsets = [0, 24], sizes = [8, 8], strides = [1, 1]} : vector<8x32xf32> to vector<8x8xf32>
    %104 = vector.shape_cast %103 : vector<8x8xf32> to vector<1x8x8xf32>
    "tpu.trace_start"() <{level = 10 : i32, message = "bqd,bkd->bqk"}> : () -> ()
    %cst_28 = arith.constant dense<0.000000e+00> : vector<1x8x8xf32>
    %105 = tpu.matmul %100, %102, %cst_28 {dimension_numbers = #tpu.dot_dimension_numbers<[2], [2], [1], [1], [0, 0, 0, 1, 1, 1], [0], [0]>} : vector<1x8x8xf32>, vector<1x8x8xf32>, vector<1x8x8xf32> -> vector<1x8x8xf32>
    "tpu.trace_stop"() : () -> ()
    %cst_29 = arith.constant dense<0xFF800000> : vector<1x8xf32>
    %106 = vector.multi_reduction <maximumf>, %105, %cst_29 [2] : vector<1x8x8xf32> to vector<1x8xf32>
    %107 = vector.shape_cast %106 : vector<1x8xf32> to vector<1x8x1xf32>
    %108 = vector.broadcast %107 : vector<1x8x1xf32> to vector<1x8x8xf32>
    %109 = arith.subf %105, %108 : vector<1x8x8xf32>
    %110 = math.exp %109 : vector<1x8x8xf32>
    %cst_30 = arith.constant dense<0.000000e+00> : vector<1x8xf32>
    %111 = vector.multi_reduction <add>, %110, %cst_30 [2] : vector<1x8x8xf32> to vector<1x8xf32>
    %112 = vector.shape_cast %111 : vector<1x8xf32> to vector<1x8x1xf32>
    %113 = tpu.reciprocal %112 {approx = true} : vector<1x8x1xf32> -> vector<1x8x1xf32>
    %114 = vector.broadcast %113 : vector<1x8x1xf32> to vector<1x8x8xf32>
    %115 = arith.mulf %110, %114 : vector<1x8x8xf32>
    "tpu.trace_start"() <{level = 10 : i32, message = "bqk,bkd->bqd"}> : () -> ()
    %cst_31 = arith.constant dense<0.000000e+00> : vector<1x8x8xf32>
    %116 = tpu.matmul %115, %104, %cst_31 {dimension_numbers = #tpu.dot_dimension_numbers<[2], [1], [1], [2], [0, 0, 0, 1, 1, 2], [0], [0]>} : vector<1x8x8xf32>, vector<1x8x8xf32>, vector<1x8x8xf32> -> vector<1x8x8xf32>
    "tpu.trace_stop"() : () -> ()
    %117 = vector.shape_cast %116 : vector<1x8x8xf32> to vector<8x8xf32>
    %118 = tpu.concatenate %60, %79, %98, %117 in 1 : vector<8x8xf32>, vector<8x8xf32>, vector<8x8xf32>, vector<8x8xf32> -> vector<8x32xf32>
    %c0_32 = arith.constant 0 : index
    %c0_33 = arith.constant 0 : index
    %119 = vector.load %arg15[%c0_32, %c0_33] : memref<8x32xf32, #tpu.memory_space<vmem>>, vector<8x32xf32>
    tpu.vector_store %arg15[%c0_32, %c0_33], %118 {strides = array<i32>} : memref<8x32xf32, #tpu.memory_space<vmem>>, vector<8x32xf32>,
    %c0_34 = arith.constant 0 : index
    %c0_35 = arith.constant 0 : index
    %120 = vector.load %arg15[%c0_34, %c0_35] : memref<8x32xf32, #tpu.memory_space<vmem>>, vector<8x32xf32>
    %c0_36 = arith.constant 0 : index
    %c0_37 = arith.constant 0 : index
    %121 = vector.load %arg7[%c0_36, %c0_37] : memref<1x32xf32, #tpu.memory_space<vmem>>, vector<1x32xf32>
    %122 = vector.shape_cast %121 : vector<1x32xf32> to vector<32xf32>
    %c0_38 = arith.constant 0 : index
    %c0_39 = arith.constant 0 : index
    %123 = vector.load %arg6[%c0_38, %c0_39] : memref<32x32xf32, #tpu.memory_space<vmem>>, vector<32x32xf32>
    %cst_40 = arith.constant dense<0.000000e+00> : vector<8x32xf32>
    %124 = tpu.matmul %120, %123, %cst_40 {dimension_numbers = #tpu.dot_dimension_numbers<[1], [0], [0], [1], [0, 0, 1, 1], [], []>} : vector<8x32xf32>, vector<32x32xf32>, vector<8x32xf32> -> vector<8x32xf32>
    %125 = vector.shape_cast %122 : vector<32xf32> to vector<1x32xf32>
    %126 = vector.broadcast %125 : vector<1x32xf32> to vector<8x32xf32>
    %127 = arith.addf %124, %126 : vector<8x32xf32>
    %128 = arith.addf %1, %127 : vector<8x32xf32>
    %c0_41 = arith.constant 0 : index
    %c0_42 = arith.constant 0 : index
    %129 = vector.load %arg8[%c0_41, %c0_42] : memref<1x32xf32, #tpu.memory_space<vmem>>, vector<1x32xf32>
    %130 = vector.shape_cast %129 : vector<1x32xf32> to vector<32xf32>
    %c0_43 = arith.constant 0 : index
    %c0_44 = arith.constant 0 : index
    %131 = vector.load %arg9[%c0_43, %c0_44] : memref<1x32xf32, #tpu.memory_space<vmem>>, vector<1x32xf32>
    %132 = vector.shape_cast %131 : vector<1x32xf32> to vector<32xf32>
    %cst_45 = arith.constant dense<0.000000e+00> : vector<8xf32>
    %133 = vector.multi_reduction <add>, %128, %cst_45 [1] : vector<8x32xf32> to vector<8xf32>
    %134 = vector.shape_cast %133 : vector<8xf32> to vector<8x1xf32>
    %cst_46 = arith.constant 3.200000e+01 : f32
    %135 = vector.broadcast %cst_46 : f32 to vector<8x1xf32>
    %136 = arith.divf %134, %135 : vector<8x1xf32>
    %137 = vector.broadcast %136 : vector<8x1xf32> to vector<8x32xf32>
    %138 = arith.subf %128, %137 : vector<8x32xf32>
    %139 = arith.mulf %138, %138 : vector<8x32xf32>
    %cst_47 = arith.constant dense<0.000000e+00> : vector<8xf32>
    %140 = vector.multi_reduction <add>, %139, %cst_47 [1] : vector<8x32xf32> to vector<8xf32>
    %141 = vector.shape_cast %140 : vector<8xf32> to vector<8x1xf32>
    %cst_48 = arith.constant 3.200000e+01 : f32
    %142 = vector.broadcast %cst_48 : f32 to vector<8x1xf32>
    %143 = arith.divf %141, %142 : vector<8x1xf32>
    %144 = vector.broadcast %136 : vector<8x1xf32> to vector<8x32xf32>
    %145 = arith.subf %128, %144 : vector<8x32xf32>
    %cst_49 = arith.constant 9.99999974E-6 : f32
    %146 = vector.broadcast %cst_49 : f32 to vector<8x1xf32>
    %147 = arith.addf %143, %146 : vector<8x1xf32>
    %148 = math.rsqrt %147 : vector<8x1xf32>
    %149 = vector.broadcast %148 : vector<8x1xf32> to vector<8x32xf32>
    %150 = arith.mulf %145, %149 : vector<8x32xf32>
    %151 = vector.shape_cast %130 : vector<32xf32> to vector<1x32xf32>
    %152 = vector.broadcast %151 : vector<1x32xf32> to vector<8x32xf32>
    %153 = arith.mulf %150, %152 : vector<8x32xf32>
    %154 = vector.shape_cast %132 : vector<32xf32> to vector<1x32xf32>
    %155 = vector.broadcast %154 : vector<1x32xf32> to vector<8x32xf32>
    %156 = arith.addf %153, %155 : vector<8x32xf32>
    %c0_50 = arith.constant 0 : index
    %c0_51 = arith.constant 0 : index
    %157 = vector.load %arg11[%c0_50, %c0_51] : memref<1x128xf32, #tpu.memory_space<vmem>>, vector<1x128xf32>
    %158 = vector.shape_cast %157 : vector<1x128xf32> to vector<128xf32>
    %c0_52 = arith.constant 0 : index
    %c0_53 = arith.constant 0 : index
    %159 = vector.load %arg10[%c0_52, %c0_53] : memref<32x128xf32, #tpu.memory_space<vmem>>, vector<32x128xf32>
    %cst_54 = arith.constant dense<0.000000e+00> : vector<8x128xf32>
    %160 = tpu.matmul %156, %159, %cst_54 {dimension_numbers = #tpu.dot_dimension_numbers<[1], [0], [0], [1], [0, 0, 1, 1], [], []>} : vector<8x32xf32>, vector<32x128xf32>, vector<8x128xf32> -> vector<8x128xf32>
    %161 = vector.shape_cast %158 : vector<128xf32> to vector<1x128xf32>
    %162 = vector.broadcast %161 : vector<1x128xf32> to vector<8x128xf32>
    %163 = arith.addf %160, %162 : vector<8x128xf32>
    %cst_55 = arith.constant 5.000000e-01 : f32
    %164 = vector.broadcast %cst_55 : f32 to vector<8x128xf32>
    %165 = arith.mulf %164, %163 : vector<8x128xf32>
    %cst_56 = arith.constant 0.707106769 : f32
    %166 = vector.broadcast %cst_56 : f32 to vector<8x128xf32>
    %167 = arith.mulf %163, %166 : vector<8x128xf32>
    %168 = math.erf %167 : vector<8x128xf32>
    %cst_57 = arith.constant 1.000000e+00 : f32
    %169 = vector.broadcast %cst_57 : f32 to vector<8x128xf32>
    %170 = arith.addf %169, %168 : vector<8x128xf32>
    %171 = arith.mulf %165, %170 : vector<8x128xf32>
    %c0_58 = arith.constant 0 : index
    %c0_59 = arith.constant 0 : index
    %172 = vector.load %arg13[%c0_58, %c0_59] : memref<1x32xf32, #tpu.memory_space<vmem>>, vector<1x32xf32>
    %173 = vector.shape_cast %172 : vector<1x32xf32> to vector<32xf32>
    %c0_60 = arith.constant 0 : index
    %c0_61 = arith.constant 0 : index
    %174 = vector.load %arg12[%c0_60, %c0_61] : memref<128x32xf32, #tpu.memory_space<vmem>>, vector<128x32xf32>
    %cst_62 = arith.constant dense<0.000000e+00> : vector<8x32xf32>
    %175 = tpu.matmul %171, %174, %cst_62 {dimension_numbers = #tpu.dot_dimension_numbers<[1], [0], [0], [1], [0, 0, 1, 1], [], []>} : vector<8x128xf32>, vector<128x32xf32>, vector<8x32xf32> -> vector<8x32xf32>
    %176 = vector.shape_cast %173 : vector<32xf32> to vector<1x32xf32>
    %177 = vector.broadcast %176 : vector<1x32xf32> to vector<8x32xf32>
    %178 = arith.addf %175, %177 : vector<8x32xf32>
    %179 = arith.addf %128, %178 : vector<8x32xf32>
    %180 = vector.shape_cast %179 : vector<8x32xf32> to vector<1x8x32xf32>
    %c0_63 = arith.constant 0 : index
    %c0_64 = arith.constant 0 : index
    %c0_65 = arith.constant 0 : index
    %181 = vector.load %arg14[%c0_63, %c0_64, %c0_65] : memref<1x8x32xf32, #tpu.memory_space<vmem>>, vector<1x8x32xf32>
    tpu.vector_store %arg14[%c0_63, %c0_64, %c0_65], %180 {strides = array<i32>} : memref<1x8x32xf32, #tpu.memory_space<vmem>>, vector<1x8x32xf32>,
    return
  }
  func.func @transform_0(%arg0: i32) -> (i32, i32, i32) {
    %c0_i32 = arith.constant 0 : i32
    %c0_i32_0 = arith.constant 0 : i32
    %c0_i32_1 = arith.constant 0 : i32
    return %arg0, %c0_i32, %c0_i32_0 : i32, i32, i32
  }
  func.func @transform_1(%arg0: i32) -> (i32, i32) {
    %c0_i32 = arith.constant 0 : i32
    %c0_i32_0 = arith.constant 0 : i32
    %c0_i32_1 = arith.constant 0 : i32
    return %c0_i32, %c0_i32_0 : i32, i32
  }
  func.func @transform_2(%arg0: i32) -> (i32, i32) {
    %c0_i32 = arith.constant 0 : i32
    %c0_i32_0 = arith.constant 0 : i32
    %c0_i32_1 = arith.constant 0 : i32
    return %c0_i32, %c0_i32_0 : i32, i32
  }
  func.func @transform_3(%arg0: i32) -> (i32, i32) {
    %c0_i32 = arith.constant 0 : i32
    %c0_i32_0 = arith.constant 0 : i32
    %c0_i32_1 = arith.constant 0 : i32
    return %c0_i32, %c0_i32_0 : i32, i32
  }
  func.func @transform_4(%arg0: i32) -> (i32, i32) {
    %c0_i32 = arith.constant 0 : i32
    %c0_i32_0 = arith.constant 0 : i32
    %c0_i32_1 = arith.constant 0 : i32
    return %c0_i32, %c0_i32_0 : i32, i32
  }
  func.func @transform_5(%arg0: i32) -> (i32, i32) {
    %c0_i32 = arith.constant 0 : i32
    %c0_i32_0 = arith.constant 0 : i32
    %c0_i32_1 = arith.constant 0 : i32
    return %c0_i32, %c0_i32_0 : i32, i32
  }
  func.func @transform_6(%arg0: i32) -> (i32, i32) {
    %c0_i32 = arith.constant 0 : i32
    %c0_i32_0 = arith.constant 0 : i32
    %c0_i32_1 = arith.constant 0 : i32
    return %c0_i32, %c0_i32_0 : i32, i32
  }
  func.func @transform_7(%arg0: i32) -> (i32, i32) {
    %c0_i32 = arith.constant 0 : i32
    %c0_i32_0 = arith.constant 0 : i32
    %c0_i32_1 = arith.constant 0 : i32
    return %c0_i32, %c0_i32_0 : i32, i32
  }
  func.func @transform_8(%arg0: i32) -> (i32, i32) {
    %c0_i32 = arith.constant 0 : i32
    %c0_i32_0 = arith.constant 0 : i32
    %c0_i32_1 = arith.constant 0 : i32
    return %c0_i32, %c0_i32_0 : i32, i32
  }
  func.func @transform_9(%arg0: i32) -> (i32, i32) {
    %c0_i32 = arith.constant 0 : i32
    %c0_i32_0 = arith.constant 0 : i32
    %c0_i32_1 = arith.constant 0 : i32
    return %c0_i32, %c0_i32_0 : i32, i32
  }
  func.func @transform_10(%arg0: i32) -> (i32, i32) {
    %c0_i32 = arith.constant 0 : i32
    %c0_i32_0 = arith.constant 0 : i32
    %c0_i32_1 = arith.constant 0 : i32
    return %c0_i32, %c0_i32_0 : i32, i32
  }
  func.func @transform_11(%arg0: i32) -> (i32, i32) {
    %c0_i32 = arith.constant 0 : i32
    %c0_i32_0 = arith.constant 0 : i32
    %c0_i32_1 = arith.constant 0 : i32
    return %c0_i32, %c0_i32_0 : i32, i32
  }
  func.func @transform_12(%arg0: i32) -> (i32, i32) {
    %c0_i32 = arith.constant 0 : i32
    %c0_i32_0 = arith.constant 0 : i32
    %c0_i32_1 = arith.constant 0 : i32
    return %c0_i32, %c0_i32_0 : i32, i32
  }
  func.func @transform_13(%arg0: i32) -> (i32, i32, i32) {
    %c0_i32 = arith.constant 0 : i32
    %c0_i32_0 = arith.constant 0 : i32
    %c0_i32_1 = arith.constant 0 : i32
    return %arg0, %c0_i32, %c0_i32_0 : i32, i32, i32
  }
}

module attributes {stable_mosaic.version = 11 : i64} {
  func.func @encoder_block_kernel(%arg0: i32, %arg1: memref<1x8x32xf32, #tpu.memory_space<vmem>>, %arg2: memref<1x32xf32, #tpu.memory_space<vmem>>, %arg3: memref<1x32xf32, #tpu.memory_space<vmem>>, %arg4: memref<32x96xf32, #tpu.memory_space<vmem>>, %arg5: memref<1x96xf32, #tpu.memory_space<vmem>>, %arg6: memref<32x32xf32, #tpu.memory_space<vmem>>, %arg7: memref<1x32xf32, #tpu.memory_space<vmem>>, %arg8: memref<1x32xf32, #tpu.memory_space<vmem>>, %arg9: memref<1x32xf32, #tpu.memory_space<vmem>>, %arg10: memref<32x128xf32, #tpu.memory_space<vmem>>, %arg11: memref<1x128xf32, #tpu.memory_space<vmem>>, %arg12: memref<128x32xf32, #tpu.memory_space<vmem>>, %arg13: memref<1x32xf32, #tpu.memory_space<vmem>>, %arg14: memref<1x8x32xf32, #tpu.memory_space<vmem>>, %arg15: memref<8x32xf32, #tpu.memory_space<vmem>>) attributes {dimension_semantics = [#tpu.dimension_semantics<parallel>], iteration_bounds = array<i64: 2>, scalar_prefetch = 0 : i64, scratch_operands = 1 : i64, tpu.core_type = #tpu.core_type<tc>, window_params = [{transform_indices = @transform_0, window_bounds = array<i64: 1, 8, 32>}, {pipeline_mode = #tpu.pipeline_mode<synchronous>, transform_indices = @transform_1, window_bounds = array<i64: 1, 32>}, {pipeline_mode = #tpu.pipeline_mode<synchronous>, transform_indices = @transform_2, window_bounds = array<i64: 1, 32>}, {pipeline_mode = #tpu.pipeline_mode<synchronous>, transform_indices = @transform_3, window_bounds = array<i64: 32, 96>}, {pipeline_mode = #tpu.pipeline_mode<synchronous>, transform_indices = @transform_4, window_bounds = array<i64: 1, 96>}, {pipeline_mode = #tpu.pipeline_mode<synchronous>, transform_indices = @transform_5, window_bounds = array<i64: 32, 32>}, {pipeline_mode = #tpu.pipeline_mode<synchronous>, transform_indices = @transform_6, window_bounds = array<i64: 1, 32>}, {pipeline_mode = #tpu.pipeline_mode<synchronous>, transform_indices = @transform_7, window_bounds = array<i64: 1, 32>}, {pipeline_mode = #tpu.pipeline_mode<synchronous>, transform_indices = @transform_8, window_bounds = array<i64: 1, 32>}, {pipeline_mode = #tpu.pipeline_mode<synchronous>, transform_indices = @transform_9, window_bounds = array<i64: 32, 128>}, {pipeline_mode = #tpu.pipeline_mode<synchronous>, transform_indices = @transform_10, window_bounds = array<i64: 1, 128>}, {pipeline_mode = #tpu.pipeline_mode<synchronous>, transform_indices = @transform_11, window_bounds = array<i64: 128, 32>}, {pipeline_mode = #tpu.pipeline_mode<synchronous>, transform_indices = @transform_12, window_bounds = array<i64: 1, 32>}, {transform_indices = @transform_13, window_bounds = array<i64: 1, 8, 32>}]} {
    %c0 = arith.constant 0 : index
    %c0_0 = arith.constant 0 : index
    %c0_1 = arith.constant 0 : index
    %0 = vector.load %arg1[%c0, %c0_0, %c0_1] : memref<1x8x32xf32, #tpu.memory_space<vmem>>, vector<1x8x32xf32>
    %1 = vector.shape_cast %0 : vector<1x8x32xf32> to vector<8x32xf32>
    %c0_2 = arith.constant 0 : index
    %c0_3 = arith.constant 0 : index
    %2 = vector.load %arg2[%c0_2, %c0_3] : memref<1x32xf32, #tpu.memory_space<vmem>>, vector<1x32xf32>
    %3 = vector.shape_cast %2 : vector<1x32xf32> to vector<32xf32>
    %c0_4 = arith.constant 0 : index
    %c0_5 = arith.constant 0 : index
    %4 = vector.load %arg3[%c0_4, %c0_5] : memref<1x32xf32, #tpu.memory_space<vmem>>, vector<1x32xf32>
    %5 = vector.shape_cast %4 : vector<1x32xf32> to vector<32xf32>
    %cst = arith.constant dense<0.000000e+00> : vector<8xf32>
    %6 = vector.multi_reduction <add>, %1, %cst [1] : vector<8x32xf32> to vector<8xf32>
    %7 = vector.shape_cast %6 : vector<8xf32> to vector<8x1xf32>
    %cst_6 = arith.constant 3.200000e+01 : f32
    %8 = vector.broadcast %cst_6 : f32 to vector<8x1xf32>
    %9 = arith.divf %7, %8 : vector<8x1xf32>
    %10 = vector.broadcast %9 : vector<8x1xf32> to vector<8x32xf32>
    %11 = arith.subf %1, %10 : vector<8x32xf32>
    %12 = arith.mulf %11, %11 : vector<8x32xf32>
    %cst_7 = arith.constant dense<0.000000e+00> : vector<8xf32>
    %13 = vector.multi_reduction <add>, %12, %cst_7 [1] : vector<8x32xf32> to vector<8xf32>
    %14 = vector.shape_cast %13 : vector<8xf32> to vector<8x1xf32>
    %cst_8 = arith.constant 3.200000e+01 : f32
    %15 = vector.broadcast %cst_8 : f32 to vector<8x1xf32>
    %16 = arith.divf %14, %15 : vector<8x1xf32>
    %17 = vector.broadcast %9 : vector<8x1xf32> to vector<8x32xf32>
    %18 = arith.subf %1, %17 : vector<8x32xf32>
    %cst_9 = arith.constant 9.99999974E-6 : f32
    %19 = vector.broadcast %cst_9 : f32 to vector<8x1xf32>
    %20 = arith.addf %16, %19 : vector<8x1xf32>
    %21 = math.rsqrt %20 : vector<8x1xf32>
    %22 = vector.broadcast %21 : vector<8x1xf32> to vector<8x32xf32>
    %23 = arith.mulf %18, %22 : vector<8x32xf32>
    %24 = vector.shape_cast %3 : vector<32xf32> to vector<1x32xf32>
    %25 = vector.broadcast %24 : vector<1x32xf32> to vector<8x32xf32>
    %26 = arith.mulf %23, %25 : vector<8x32xf32>
    %27 = vector.shape_cast %5 : vector<32xf32> to vector<1x32xf32>
    %28 = vector.broadcast %27 : vector<1x32xf32> to vector<8x32xf32>
    %29 = arith.addf %26, %28 : vector<8x32xf32>
    %c0_10 = arith.constant 0 : index
    %c0_11 = arith.constant 0 : index
    %30 = vector.load %arg5[%c0_10, %c0_11] : memref<1x96xf32, #tpu.memory_space<vmem>>, vector<1x96xf32>
    %31 = vector.shape_cast %30 : vector<1x96xf32> to vector<96xf32>
    %c0_12 = arith.constant 0 : index
    %c0_13 = arith.constant 0 : index
    %32 = vector.load %arg4[%c0_12, %c0_13] : memref<32x96xf32, #tpu.memory_space<vmem>>, vector<32x96xf32>
    %cst_14 = arith.constant dense<0.000000e+00> : vector<8x96xf32>
    %33 = tpu.matmul %29, %32, %cst_14 {dimension_numbers = #tpu.dot_dimension_numbers<[1], [0], [0], [1], [0, 0, 1, 1], [], []>} : vector<8x32xf32>, vector<32x96xf32>, vector<8x96xf32> -> vector<8x96xf32>
    %34 = vector.shape_cast %31 : vector<96xf32> to vector<1x96xf32>
    %35 = vector.broadcast %34 : vector<1x96xf32> to vector<8x96xf32>
    %36 = arith.addf %33, %35 : vector<8x96xf32>
    %37 = vector.extract_strided_slice %36 {offsets = [0, 0], sizes = [8, 32], strides = [1, 1]} : vector<8x96xf32> to vector<8x32xf32>
    %cst_15 = arith.constant 0.353553385 : f32
    %38 = vector.broadcast %cst_15 : f32 to vector<8x32xf32>
    %39 = arith.mulf %37, %38 : vector<8x32xf32>
    %40 = vector.extract_strided_slice %36 {offsets = [0, 32], sizes = [8, 32], strides = [1, 1]} : vector<8x96xf32> to vector<8x32xf32>
    %41 = vector.extract_strided_slice %36 {offsets = [0, 64], sizes = [8, 32], strides = [1, 1]} : vector<8x96xf32> to vector<8x32xf32>
    %42 = vector.extract_strided_slice %39 {offsets = [0, 0], sizes = [8, 8], strides = [1, 1]} : vector<8x32xf32> to vector<8x8xf32>
    %43 = vector.shape_cast %42 : vector<8x8xf32> to vector<1x8x8xf32>
    %44 = vector.extract_strided_slice %40 {offsets = [0, 0], sizes = [8, 8], strides = [1, 1]} : vector<8x32xf32> to vector<8x8xf32>
    %45 = vector.shape_cast %44 : vector<8x8xf32> to vector<1x8x8xf32>
    %46 = vector.extract_strided_slice %41 {offsets = [0, 0], sizes = [8, 8], strides = [1, 1]} : vector<8x32xf32> to vector<8x8xf32>
    %47 = vector.shape_cast %46 : vector<8x8xf32> to vector<1x8x8xf32>
    "tpu.trace_start"() <{level = 10 : i32, message = "bqd,bkd->bqk"}> : () -> ()
    %cst_16 = arith.constant dense<0.000000e+00> : vector<1x8x8xf32>
    %48 = tpu.matmul %43, %45, %cst_16 {dimension_numbers = #tpu.dot_dimension_numbers<[2], [2], [1], [1], [0, 0, 0, 1, 1, 1], [0], [0]>} : vector<1x8x8xf32>, vector<1x8x8xf32>, vector<1x8x8xf32> -> vector<1x8x8xf32>
    "tpu.trace_stop"() : () -> ()
    %cst_17 = arith.constant dense<0xFF800000> : vector<1x8xf32>
    %49 = vector.multi_reduction <maximumf>, %48, %cst_17 [2] : vector<1x8x8xf32> to vector<1x8xf32>
    %50 = vector.shape_cast %49 : vector<1x8xf32> to vector<1x8x1xf32>
    %51 = vector.broadcast %50 : vector<1x8x1xf32> to vector<1x8x8xf32>
    %52 = arith.subf %48, %51 : vector<1x8x8xf32>
    %53 = math.exp %52 : vector<1x8x8xf32>
    %cst_18 = arith.constant dense<0.000000e+00> : vector<1x8xf32>
    %54 = vector.multi_reduction <add>, %53, %cst_18 [2] : vector<1x8x8xf32> to vector<1x8xf32>
    %55 = vector.shape_cast %54 : vector<1x8xf32> to vector<1x8x1xf32>
    %56 = tpu.reciprocal %55 {approx = true} : vector<1x8x1xf32> -> vector<1x8x1xf32>
    %57 = vector.broadcast %56 : vector<1x8x1xf32> to vector<1x8x8xf32>
    %58 = arith.mulf %53, %57 : vector<1x8x8xf32>
    "tpu.trace_start"() <{level = 10 : i32, message = "bqk,bkd->bqd"}> : () -> ()
    %cst_19 = arith.constant dense<0.000000e+00> : vector<1x8x8xf32>
    %59 = tpu.matmul %58, %47, %cst_19 {dimension_numbers = #tpu.dot_dimension_numbers<[2], [1], [1], [2], [0, 0, 0, 1, 1, 2], [0], [0]>} : vector<1x8x8xf32>, vector<1x8x8xf32>, vector<1x8x8xf32> -> vector<1x8x8xf32>
    "tpu.trace_stop"() : () -> ()
    %60 = vector.shape_cast %59 : vector<1x8x8xf32> to vector<8x8xf32>
    %61 = vector.extract_strided_slice %39 {offsets = [0, 8], sizes = [8, 8], strides = [1, 1]} : vector<8x32xf32> to vector<8x8xf32>
    %62 = vector.shape_cast %61 : vector<8x8xf32> to vector<1x8x8xf32>
    %63 = vector.extract_strided_slice %40 {offsets = [0, 8], sizes = [8, 8], strides = [1, 1]} : vector<8x32xf32> to vector<8x8xf32>
    %64 = vector.shape_cast %63 : vector<8x8xf32> to vector<1x8x8xf32>
    %65 = vector.extract_strided_slice %41 {offsets = [0, 8], sizes = [8, 8], strides = [1, 1]} : vector<8x32xf32> to vector<8x8xf32>
    %66 = vector.shape_cast %65 : vector<8x8xf32> to vector<1x8x8xf32>
    "tpu.trace_start"() <{level = 10 : i32, message = "bqd,bkd->bqk"}> : () -> ()
    %cst_20 = arith.constant dense<0.000000e+00> : vector<1x8x8xf32>
    %67 = tpu.matmul %62, %64, %cst_20 {dimension_numbers = #tpu.dot_dimension_numbers<[2], [2], [1], [1], [0, 0, 0, 1, 1, 1], [0], [0]>} : vector<1x8x8xf32>, vector<1x8x8xf32>, vector<1x8x8xf32> -> vector<1x8x8xf32>
    "tpu.trace_stop"() : () -> ()
    %cst_21 = arith.constant dense<0xFF800000> : vector<1x8xf32>
    %68 = vector.multi_reduction <maximumf>, %67, %cst_21 [2] : vector<1x8x8xf32> to vector<1x8xf32>
    %69 = vector.shape_cast %68 : vector<1x8xf32> to vector<1x8x1xf32>
    %70 = vector.broadcast %69 : vector<1x8x1xf32> to vector<1x8x8xf32>
    %71 = arith.subf %67, %70 : vector<1x8x8xf32>
    %72 = math.exp %71 : vector<1x8x8xf32>
    %cst_22 = arith.constant dense<0.000000e+00> : vector<1x8xf32>
    %73 = vector.multi_reduction <add>, %72, %cst_22 [2] : vector<1x8x8xf32> to vector<1x8xf32>
    %74 = vector.shape_cast %73 : vector<1x8xf32> to vector<1x8x1xf32>
    %75 = tpu.reciprocal %74 {approx = true} : vector<1x8x1xf32> -> vector<1x8x1xf32>
    %76 = vector.broadcast %75 : vector<1x8x1xf32> to vector<1x8x8xf32>
    %77 = arith.mulf %72, %76 : vector<1x8x8xf32>
    "tpu.trace_start"() <{level = 10 : i32, message = "bqk,bkd->bqd"}> : () -> ()
    %cst_23 = arith.constant dense<0.000000e+00> : vector<1x8x8xf32>
    %78 = tpu.matmul %77, %66, %cst_23 {dimension_numbers = #tpu.dot_dimension_numbers<[2], [1], [1], [2], [0, 0, 0, 1, 1, 2], [0], [0]>} : vector<1x8x8xf32>, vector<1x8x8xf32>, vector<1x8x8xf32> -> vector<1x8x8xf32>
    "tpu.trace_stop"() : () -> ()
    %79 = vector.shape_cast %78 : vector<1x8x8xf32> to vector<8x8xf32>
    %80 = vector.extract_strided_slice %39 {offsets = [0, 16], sizes = [8, 8], strides = [1, 1]} : vector<8x32xf32> to vector<8x8xf32>
    %81 = vector.shape_cast %80 : vector<8x8xf32> to vector<1x8x8xf32>
    %82 = vector.extract_strided_slice %40 {offsets = [0, 16], sizes = [8, 8], strides = [1, 1]} : vector<8x32xf32> to vector<8x8xf32>
    %83 = vector.shape_cast %82 : vector<8x8xf32> to vector<1x8x8xf32>
    %84 = vector.extract_strided_slice %41 {offsets = [0, 16], sizes = [8, 8], strides = [1, 1]} : vector<8x32xf32> to vector<8x8xf32>
    %85 = vector.shape_cast %84 : vector<8x8xf32> to vector<1x8x8xf32>
    "tpu.trace_start"() <{level = 10 : i32, message = "bqd,bkd->bqk"}> : () -> ()
    %cst_24 = arith.constant dense<0.000000e+00> : vector<1x8x8xf32>
    %86 = tpu.matmul %81, %83, %cst_24 {dimension_numbers = #tpu.dot_dimension_numbers<[2], [2], [1], [1], [0, 0, 0, 1, 1, 1], [0], [0]>} : vector<1x8x8xf32>, vector<1x8x8xf32>, vector<1x8x8xf32> -> vector<1x8x8xf32>
    "tpu.trace_stop"() : () -> ()
    %cst_25 = arith.constant dense<0xFF800000> : vector<1x8xf32>
    %87 = vector.multi_reduction <maximumf>, %86, %cst_25 [2] : vector<1x8x8xf32> to vector<1x8xf32>
    %88 = vector.shape_cast %87 : vector<1x8xf32> to vector<1x8x1xf32>
    %89 = vector.broadcast %88 : vector<1x8x1xf32> to vector<1x8x8xf32>
    %90 = arith.subf %86, %89 : vector<1x8x8xf32>
    %91 = math.exp %90 : vector<1x8x8xf32>
    %cst_26 = arith.constant dense<0.000000e+00> : vector<1x8xf32>
    %92 = vector.multi_reduction <add>, %91, %cst_26 [2] : vector<1x8x8xf32> to vector<1x8xf32>
    %93 = vector.shape_cast %92 : vector<1x8xf32> to vector<1x8x1xf32>
    %94 = tpu.reciprocal %93 {approx = true} : vector<1x8x1xf32> -> vector<1x8x1xf32>
    %95 = vector.broadcast %94 : vector<1x8x1xf32> to vector<1x8x8xf32>
    %96 = arith.mulf %91, %95 : vector<1x8x8xf32>
    "tpu.trace_start"() <{level = 10 : i32, message = "bqk,bkd->bqd"}> : () -> ()
    %cst_27 = arith.constant dense<0.000000e+00> : vector<1x8x8xf32>
    %97 = tpu.matmul %96, %85, %cst_27 {dimension_numbers = #tpu.dot_dimension_numbers<[2], [1], [1], [2], [0, 0, 0, 1, 1, 2], [0], [0]>} : vector<1x8x8xf32>, vector<1x8x8xf32>, vector<1x8x8xf32> -> vector<1x8x8xf32>
    "tpu.trace_stop"() : () -> ()
    %98 = vector.shape_cast %97 : vector<1x8x8xf32> to vector<8x8xf32>
    %99 = vector.extract_strided_slice %39 {offsets = [0, 24], sizes = [8, 8], strides = [1, 1]} : vector<8x32xf32> to vector<8x8xf32>
    %100 = vector.shape_cast %99 : vector<8x8xf32> to vector<1x8x8xf32>
    %101 = vector.extract_strided_slice %40 {offsets = [0, 24], sizes = [8, 8], strides = [1, 1]} : vector<8x32xf32> to vector<8x8xf32>
    %102 = vector.shape_cast %101 : vector<8x8xf32> to vector<1x8x8xf32>
    %103 = vector.extract_strided_slice %41 {offsets = [0, 24], sizes = [8, 8], strides = [1, 1]} : vector<8x32xf32> to vector<8x8xf32>
    %104 = vector.shape_cast %103 : vector<8x8xf32> to vector<1x8x8xf32>
    "tpu.trace_start"() <{level = 10 : i32, message = "bqd,bkd->bqk"}> : () -> ()
    %cst_28 = arith.constant dense<0.000000e+00> : vector<1x8x8xf32>
    %105 = tpu.matmul %100, %102, %cst_28 {dimension_numbers = #tpu.dot_dimension_numbers<[2], [2], [1], [1], [0, 0, 0, 1, 1, 1], [0], [0]>} : vector<1x8x8xf32>, vector<1x8x8xf32>, vector<1x8x8xf32> -> vector<1x8x8xf32>
    "tpu.trace_stop"() : () -> ()
    %cst_29 = arith.constant dense<0xFF800000> : vector<1x8xf32>
    %106 = vector.multi_reduction <maximumf>, %105, %cst_29 [2] : vector<1x8x8xf32> to vector<1x8xf32>
    %107 = vector.shape_cast %106 : vector<1x8xf32> to vector<1x8x1xf32>
    %108 = vector.broadcast %107 : vector<1x8x1xf32> to vector<1x8x8xf32>
    %109 = arith.subf %105, %108 : vector<1x8x8xf32>
    %110 = math.exp %109 : vector<1x8x8xf32>
    %cst_30 = arith.constant dense<0.000000e+00> : vector<1x8xf32>
    %111 = vector.multi_reduction <add>, %110, %cst_30 [2] : vector<1x8x8xf32> to vector<1x8xf32>
    %112 = vector.shape_cast %111 : vector<1x8xf32> to vector<1x8x1xf32>
    %113 = tpu.reciprocal %112 {approx = true} : vector<1x8x1xf32> -> vector<1x8x1xf32>
    %114 = vector.broadcast %113 : vector<1x8x1xf32> to vector<1x8x8xf32>
    %115 = arith.mulf %110, %114 : vector<1x8x8xf32>
    "tpu.trace_start"() <{level = 10 : i32, message = "bqk,bkd->bqd"}> : () -> ()
    %cst_31 = arith.constant dense<0.000000e+00> : vector<1x8x8xf32>
    %116 = tpu.matmul %115, %104, %cst_31 {dimension_numbers = #tpu.dot_dimension_numbers<[2], [1], [1], [2], [0, 0, 0, 1, 1, 2], [0], [0]>} : vector<1x8x8xf32>, vector<1x8x8xf32>, vector<1x8x8xf32> -> vector<1x8x8xf32>
    "tpu.trace_stop"() : () -> ()
    %117 = vector.shape_cast %116 : vector<1x8x8xf32> to vector<8x8xf32>
    %118 = tpu.concatenate %60, %79, %98, %117 in 1 : vector<8x8xf32>, vector<8x8xf32>, vector<8x8xf32>, vector<8x8xf32> -> vector<8x32xf32>
    %c0_32 = arith.constant 0 : index
    %c0_33 = arith.constant 0 : index
    %119 = vector.load %arg15[%c0_32, %c0_33] : memref<8x32xf32, #tpu.memory_space<vmem>>, vector<8x32xf32>
    tpu.vector_store %arg15[%c0_32, %c0_33], %118 {strides = array<i32>} : memref<8x32xf32, #tpu.memory_space<vmem>>, vector<8x32xf32>,
    %c0_34 = arith.constant 0 : index
    %c0_35 = arith.constant 0 : index
    %120 = vector.load %arg15[%c0_34, %c0_35] : memref<8x32xf32, #tpu.memory_space<vmem>>, vector<8x32xf32>
    %c0_36 = arith.constant 0 : index
    %c0_37 = arith.constant 0 : index
    %121 = vector.load %arg7[%c0_36, %c0_37] : memref<1x32xf32, #tpu.memory_space<vmem>>, vector<1x32xf32>
    %122 = vector.shape_cast %121 : vector<1x32xf32> to vector<32xf32>
    %c0_38 = arith.constant 0 : index
    %c0_39 = arith.constant 0 : index
    %123 = vector.load %arg6[%c0_38, %c0_39] : memref<32x32xf32, #tpu.memory_space<vmem>>, vector<32x32xf32>
    %cst_40 = arith.constant dense<0.000000e+00> : vector<8x32xf32>
    %124 = tpu.matmul %120, %123, %cst_40 {dimension_numbers = #tpu.dot_dimension_numbers<[1], [0], [0], [1], [0, 0, 1, 1], [], []>} : vector<8x32xf32>, vector<32x32xf32>, vector<8x32xf32> -> vector<8x32xf32>
    %125 = vector.shape_cast %122 : vector<32xf32> to vector<1x32xf32>
    %126 = vector.broadcast %125 : vector<1x32xf32> to vector<8x32xf32>
    %127 = arith.addf %124, %126 : vector<8x32xf32>
    %128 = arith.addf %1, %127 : vector<8x32xf32>
    %c0_41 = arith.constant 0 : index
    %c0_42 = arith.constant 0 : index
    %129 = vector.load %arg8[%c0_41, %c0_42] : memref<1x32xf32, #tpu.memory_space<vmem>>, vector<1x32xf32>
    %130 = vector.shape_cast %129 : vector<1x32xf32> to vector<32xf32>
    %c0_43 = arith.constant 0 : index
    %c0_44 = arith.constant 0 : index
    %131 = vector.load %arg9[%c0_43, %c0_44] : memref<1x32xf32, #tpu.memory_space<vmem>>, vector<1x32xf32>
    %132 = vector.shape_cast %131 : vector<1x32xf32> to vector<32xf32>
    %cst_45 = arith.constant dense<0.000000e+00> : vector<8xf32>
    %133 = vector.multi_reduction <add>, %128, %cst_45 [1] : vector<8x32xf32> to vector<8xf32>
    %134 = vector.shape_cast %133 : vector<8xf32> to vector<8x1xf32>
    %cst_46 = arith.constant 3.200000e+01 : f32
    %135 = vector.broadcast %cst_46 : f32 to vector<8x1xf32>
    %136 = arith.divf %134, %135 : vector<8x1xf32>
    %137 = vector.broadcast %136 : vector<8x1xf32> to vector<8x32xf32>
    %138 = arith.subf %128, %137 : vector<8x32xf32>
    %139 = arith.mulf %138, %138 : vector<8x32xf32>
    %cst_47 = arith.constant dense<0.000000e+00> : vector<8xf32>
    %140 = vector.multi_reduction <add>, %139, %cst_47 [1] : vector<8x32xf32> to vector<8xf32>
    %141 = vector.shape_cast %140 : vector<8xf32> to vector<8x1xf32>
    %cst_48 = arith.constant 3.200000e+01 : f32
    %142 = vector.broadcast %cst_48 : f32 to vector<8x1xf32>
    %143 = arith.divf %141, %142 : vector<8x1xf32>
    %144 = vector.broadcast %136 : vector<8x1xf32> to vector<8x32xf32>
    %145 = arith.subf %128, %144 : vector<8x32xf32>
    %cst_49 = arith.constant 9.99999974E-6 : f32
    %146 = vector.broadcast %cst_49 : f32 to vector<8x1xf32>
    %147 = arith.addf %143, %146 : vector<8x1xf32>
    %148 = math.rsqrt %147 : vector<8x1xf32>
    %149 = vector.broadcast %148 : vector<8x1xf32> to vector<8x32xf32>
    %150 = arith.mulf %145, %149 : vector<8x32xf32>
    %151 = vector.shape_cast %130 : vector<32xf32> to vector<1x32xf32>
    %152 = vector.broadcast %151 : vector<1x32xf32> to vector<8x32xf32>
    %153 = arith.mulf %150, %152 : vector<8x32xf32>
    %154 = vector.shape_cast %132 : vector<32xf32> to vector<1x32xf32>
    %155 = vector.broadcast %154 : vector<1x32xf32> to vector<8x32xf32>
    %156 = arith.addf %153, %155 : vector<8x32xf32>
    %c0_50 = arith.constant 0 : index
    %c0_51 = arith.constant 0 : index
    %157 = vector.load %arg11[%c0_50, %c0_51] : memref<1x128xf32, #tpu.memory_space<vmem>>, vector<1x128xf32>
    %158 = vector.shape_cast %157 : vector<1x128xf32> to vector<128xf32>
    %c0_52 = arith.constant 0 : index
    %c0_53 = arith.constant 0 : index
    %159 = vector.load %arg10[%c0_52, %c0_53] : memref<32x128xf32, #tpu.memory_space<vmem>>, vector<32x128xf32>
    %cst_54 = arith.constant dense<0.000000e+00> : vector<8x128xf32>
    %160 = tpu.matmul %156, %159, %cst_54 {dimension_numbers = #tpu.dot_dimension_numbers<[1], [0], [0], [1], [0, 0, 1, 1], [], []>} : vector<8x32xf32>, vector<32x128xf32>, vector<8x128xf32> -> vector<8x128xf32>
    %161 = vector.shape_cast %158 : vector<128xf32> to vector<1x128xf32>
    %162 = vector.broadcast %161 : vector<1x128xf32> to vector<8x128xf32>
    %163 = arith.addf %160, %162 : vector<8x128xf32>
    %cst_55 = arith.constant 5.000000e-01 : f32
    %164 = vector.broadcast %cst_55 : f32 to vector<8x128xf32>
    %165 = arith.mulf %164, %163 : vector<8x128xf32>
    %cst_56 = arith.constant 0.707106769 : f32
    %166 = vector.broadcast %cst_56 : f32 to vector<8x128xf32>
    %167 = arith.mulf %163, %166 : vector<8x128xf32>
    %168 = math.erf %167 : vector<8x128xf32>
    %cst_57 = arith.constant 1.000000e+00 : f32
    %169 = vector.broadcast %cst_57 : f32 to vector<8x128xf32>
    %170 = arith.addf %169, %168 : vector<8x128xf32>
    %171 = arith.mulf %165, %170 : vector<8x128xf32>
    %c0_58 = arith.constant 0 : index
    %c0_59 = arith.constant 0 : index
    %172 = vector.load %arg13[%c0_58, %c0_59] : memref<1x32xf32, #tpu.memory_space<vmem>>, vector<1x32xf32>
    %173 = vector.shape_cast %172 : vector<1x32xf32> to vector<32xf32>
    %c0_60 = arith.constant 0 : index
    %c0_61 = arith.constant 0 : index
    %174 = vector.load %arg12[%c0_60, %c0_61] : memref<128x32xf32, #tpu.memory_space<vmem>>, vector<128x32xf32>
    %cst_62 = arith.constant dense<0.000000e+00> : vector<8x32xf32>
    %175 = tpu.matmul %171, %174, %cst_62 {dimension_numbers = #tpu.dot_dimension_numbers<[1], [0], [0], [1], [0, 0, 1, 1], [], []>} : vector<8x128xf32>, vector<128x32xf32>, vector<8x32xf32> -> vector<8x32xf32>
    %176 = vector.shape_cast %173 : vector<32xf32> to vector<1x32xf32>
    %177 = vector.broadcast %176 : vector<1x32xf32> to vector<8x32xf32>
    %178 = arith.addf %175, %177 : vector<8x32xf32>
    %179 = arith.addf %128, %178 : vector<8x32xf32>
    %180 = vector.shape_cast %179 : vector<8x32xf32> to vector<1x8x32xf32>
    %c0_63 = arith.constant 0 : index
    %c0_64 = arith.constant 0 : index
    %c0_65 = arith.constant 0 : index
    %181 = vector.load %arg14[%c0_63, %c0_64, %c0_65] : memref<1x8x32xf32, #tpu.memory_space<vmem>>, vector<1x8x32xf32>
    tpu.vector_store %arg14[%c0_63, %c0_64, %c0_65], %180 {strides = array<i32>} : memref<1x8x32xf32, #tpu.memory_space<vmem>>, vector<1x8x32xf32>,
    return
  }
  func.func @transform_0(%arg0: i32) -> (i32, i32, i32) {
    %c0_i32 = arith.constant 0 : i32
    %c0_i32_0 = arith.constant 0 : i32
    %c0_i32_1 = arith.constant 0 : i32
    return %arg0, %c0_i32, %c0_i32_0 : i32, i32, i32
  }
  func.func @transform_1(%arg0: i32) -> (i32, i32) {
    %c0_i32 = arith.constant 0 : i32
    %c0_i32_0 = arith.constant 0 : i32
    %c0_i32_1 = arith.constant 0 : i32
    return %c0_i32, %c0_i32_0 : i32, i32
  }
  func.func @transform_2(%arg0: i32) -> (i32, i32) {
    %c0_i32 = arith.constant 0 : i32
    %c0_i32_0 = arith.constant 0 : i32
    %c0_i32_1 = arith.constant 0 : i32
    return %c0_i32, %c0_i32_0 : i32, i32
  }
  func.func @transform_3(%arg0: i32) -> (i32, i32) {
    %c0_i32 = arith.constant 0 : i32
    %c0_i32_0 = arith.constant 0 : i32
    %c0_i32_1 = arith.constant 0 : i32
    return %c0_i32, %c0_i32_0 : i32, i32
  }
  func.func @transform_4(%arg0: i32) -> (i32, i32) {
    %c0_i32 = arith.constant 0 : i32
    %c0_i32_0 = arith.constant 0 : i32
    %c0_i32_1 = arith.constant 0 : i32
    return %c0_i32, %c0_i32_0 : i32, i32
  }
  func.func @transform_5(%arg0: i32) -> (i32, i32) {
    %c0_i32 = arith.constant 0 : i32
    %c0_i32_0 = arith.constant 0 : i32
    %c0_i32_1 = arith.constant 0 : i32
    return %c0_i32, %c0_i32_0 : i32, i32
  }
  func.func @transform_6(%arg0: i32) -> (i32, i32) {
    %c0_i32 = arith.constant 0 : i32
    %c0_i32_0 = arith.constant 0 : i32
    %c0_i32_1 = arith.constant 0 : i32
    return %c0_i32, %c0_i32_0 : i32, i32
  }
  func.func @transform_7(%arg0: i32) -> (i32, i32) {
    %c0_i32 = arith.constant 0 : i32
    %c0_i32_0 = arith.constant 0 : i32
    %c0_i32_1 = arith.constant 0 : i32
    return %c0_i32, %c0_i32_0 : i32, i32
  }
  func.func @transform_8(%arg0: i32) -> (i32, i32) {
    %c0_i32 = arith.constant 0 : i32
    %c0_i32_0 = arith.constant 0 : i32
    %c0_i32_1 = arith.constant 0 : i32
    return %c0_i32, %c0_i32_0 : i32, i32
  }
  func.func @transform_9(%arg0: i32) -> (i32, i32) {
    %c0_i32 = arith.constant 0 : i32
    %c0_i32_0 = arith.constant 0 : i32
    %c0_i32_1 = arith.constant 0 : i32
    return %c0_i32, %c0_i32_0 : i32, i32
  }
  func.func @transform_10(%arg0: i32) -> (i32, i32) {
    %c0_i32 = arith.constant 0 : i32
    %c0_i32_0 = arith.constant 0 : i32
    %c0_i32_1 = arith.constant 0 : i32
    return %c0_i32, %c0_i32_0 : i32, i32
  }
  func.func @transform_11(%arg0: i32) -> (i32, i32) {
    %c0_i32 = arith.constant 0 : i32
    %c0_i32_0 = arith.constant 0 : i32
    %c0_i32_1 = arith.constant 0 : i32
    return %c0_i32, %c0_i32_0 : i32, i32
  }
  func.func @transform_12(%arg0: i32) -> (i32, i32) {
    %c0_i32 = arith.constant 0 : i32
    %c0_i32_0 = arith.constant 0 : i32
    %c0_i32_1 = arith.constant 0 : i32
    return %c0_i32, %c0_i32_0 : i32, i32
  }
  func.func @transform_13(%arg0: i32) -> (i32, i32, i32) {
    %c0_i32 = arith.constant 0 : i32
    %c0_i32_0 = arith.constant 0 : i32
    %c0_i32_1 = arith.constant 0 : i32
    return %arg0, %c0_i32, %c0_i32_0 : i32, i32, i32
  }
}

</mosaic_0001>

<bundles_post_ra>
// kernel: tpu_custom_call.1
= control target key start
LH: loop header
LB: loop body
LE: loop exit
PB: predicated region body
PF: predicated region fallthrough
CT: control target
= control target key end

     0   :  { %s1556_s0 = inlined_call_operand.vmem [shape: f32[2,8,32], index: 0, kind: input, shape index: {}]   ;;  %s1557_s1 = inlined_call_operand.vmem [shape: f32[1,32], index: 1, kind: input, shape index: {}]   ;;  %s1558_s2 = inlined_call_operand.vmem [shape: f32[1,32], index: 2, kind: input, shape index: {}]   ;;  %s1559_s3 = inlined_call_operand.vmem [shape: f32[32,96], index: 3, kind: input, shape index: {}]   ;;  %s1560_s4 = inlined_call_operand.vmem [shape: f32[1,96], index: 4, kind: input, shape index: {}]   ;;  %s1561_s5 = inlined_call_operand.vmem [shape: f32[32,32], index: 5, kind: input, shape index: {}]   ;;  %s1562_s6 = inlined_call_operand.vmem [shape: f32[1,32], index: 6, kind: input, shape index: {}]   ;;  %s1563_s7 = inlined_call_operand.vmem [shape: f32[1,32], index: 7, kind: input, shape index: {}]   ;;  %s1564_s8 = inlined_call_operand.vmem [shape: f32[1,32], index: 8, kind: input, shape index: {}]   ;;  %s1565_s9 = inlined_call_operand.vmem [shape: f32[32,128], index: 9, kind: input, shape index: {}]   ;;  %s1566_s10 = inlined_call_operand.vmem [shape: f32[1,128], index: 10, kind: input, shape index: {}]   ;;  %s1567_s11 = inlined_call_operand.vmem [shape: f32[128,32], index: 11, kind: input, shape index: {}]   ;;  %s1568_s12 = inlined_call_operand.vmem [shape: f32[1,32], index: 12, kind: input, shape index: {}]   ;;  %s1569_s13 = inlined_call_operand.hbm [shape: f32[2,8,32], index: 13, kind: output, shape index: {}]  }
   0x1   :  { %1570 = sst [smem:[#allocation6_spill]] %s1556_s0 }
   0x2   :  { %1571 = sst [smem:[#allocation7_spill]] %s1557_s1 }
   0x3   :  { %1572 = sst [smem:[#allocation8_spill]] %s1558_s2 }
   0x4   :  { %1573 = sst [smem:[#allocation9_spill]] %s1559_s3 }
   0x5   :  { %18 = vsyncpa [#allocation4], 0 }
   0x6   :  { %20 = vsyncpa [#allocation4 + $0x1], 0  ;;  %s1306_s25 = smov 0   ;;  %s1308_s26 = smov 0  }
   0x7   :  { %s1310_s27 = smov 0   ;;  %s1312_s28 = smov 0  }
   0x8 LB: > { %s1327_s29 = sadd.s32 4294967295, %s1219_s28   ;;  %s1045_s30 = sadd.s32 4294967294, %s1219_s28   ;;  %s1219_s28 = sphi %s1312_s28, %s1583_s28   ;;  %s1215_s27 = sphi %s1310_s27, %s1582_s27   ;;  %s1211_s26 = sphi %s1308_s26, %s1581_s26   ;;  %s1207_s25 = sphi %s1306_s25, %s1580_s25  }
   0x9   : > { %s1331_s14 = sadd.s32 1, %s1219_s28   ;;  %s311_s15 = sadd.s32 1, %s1215_s27 }
   0xa   : > { %s308_s16 = ssub.s32 %s1219_s28, %s1331_s14  ;;  %p321_p0 = scmp.ne.s32.totalorder %s1215_s27, %s1211_s26 }
   0xb   : > { %p309_p1 = scmp.eq.s32.totalorder %s308_s16, 0  ;;  %p322_p2 = scmp.eq.s32.totalorder %s1327_s29, 1 }
   0xc   : > { %p327_p3 = scmp.ne.s32.totalorder %s1211_s26, %s1207_s25  ;;  %p328_p4 = scmp.eq.s32.totalorder %s1045_s30, 1 }
   0xd   : > { %s1342_s17 = scalar_select %p309_p1, %s1215_s27, %s311_s15  }
   0xe   : > { %p1344_p5 = por %p322_p2, %p321_p0  ;;  %p1348_p6 = por %p328_p4, %p327_p3 }
   0xf   : > { %p1048_p7 = scmp.ge.s32.totalorder %s1219_s28, 1  ;;  %p389_p8 = scmp.lt.s32.totalorder %s1219_s28, 3 }
  0x11   : > { %p390_p9 = pnand %p1048_p7, %p389_p8 }
  0x12   : > { %p432_p10 = scmp.lt.s32.totalorder (!%p390_p9), %s1327_s29, 1  ;;  %s1576_s0 = sld [smem:[#allocation6_spill]] (!%p390_p9) }
  0x13   : > { %393 = sbr.rel (%p390_p9) target bundleno = 1924 (0x784), region = 72  ;;  %s1577_s3 = sld [smem:[#allocation9_spill]] (!%p390_p9) }
  0x14   : > { %s1578_s1 = sld [smem:[#allocation7_spill]] (!%p390_p9)  ;;  %s1222_s23 = smov (!%p390_p9), 96  }
  0x15   : > { %s1579_s2 = sld [smem:[#allocation8_spill]] (!%p390_p9)  ;;  %s1224_s30 = smov (!%p390_p9), 120  }
  0x16   : > { %s1225_s15 = smov (!%p390_p9), 88   ;;  %s1226_s16 = smov (!%p390_p9), 80  }
  0x17   : > { %s1229_s22 = smov (!%p390_p9), 64  }
  0x18   : > { %s433_s20 = scalar_select %p432_p10, %s1327_s29, 1  ;;  %vm439_vm0 = vcmask 261120   ;;  %v1221_v2 = vmov 32.0   ;;  %v1127_v33 = vld [vmem:[%s1560_s4] ss:$0 sm:$0xff]  ;;  %vm512_vm5 = vcmask 64512  }
  0x19   : > { %1133 = vrcp.f32 %v1221_v2  ;;  %v481_v14 = vld [vmem:[%s1577_s3 + $0x18] sm:$0xff]  ;;  %v480_v15 = vld [vmem:[%s1577_s3 + $0x10] sm:$0xff]  ;;  %v479_v16 = vld [vmem:[%s1577_s3 + $0x8] sm:$0xff]  ;;  %vm783_vm6 = vcmask 130048   ;;  %vm785_vm7 = vcmask 195584  }
  0x1a   : > { %s1050_s21 = sshll.u32 %s433_s20, 3  ;;  %500 = vmatpush.msra.mxu2 %v481_v14  ;;  %v478_v17 = vld [vmem:[%s1577_s3] sm:$0xff]  ;;  %s1227_s20 = smov 72  }
  0x1b   : > { %s435_s24 = scalar_lea.vmem %s1576_s0, %s1050_s21  ;;  %v1125_v27 = vld [vmem:[%s1578_s1] ss:$0 sm:$0xff]  ;;  %s1228_s21 = smov 104  }
  0x1c   : > { %v1359_v0 = vld [vmem:[%s435_s24] sm:$0xff]  ;;  %501 = vmatpush.msra.mxu2 %v480_v15  ;;  %s1223_s24 = smov 112   ;;  %s1068_s0 = sshll.u32 %s1327_s29, 3 }
  0x1d   : > { %v440_v1 = vsel %vm439_vm0, %v1359_v0, 0.0  ;;  %v1126_v30 = vld [vmem:[%s1579_s2] ss:$0 sm:$0xff] }
  0x1e   : > { %441 = vadd.xlane.f32.xlu0 %v440_v1  ;;  %502 = vmatpush.msra.mxu2 %v479_v16 }
  0x1f   : > { %v1134_v3 = vpop.eup %1133 }
  0x20   : > { %v444_v4 = vmul.f32 32.0, %v1134_v3  ;;  %vm448_vm1 = vweird.f32 %v1134_v3  ;;  %503 = vmatpush.msra.mxu2 %v478_v17 }
  0x22   : > { %v445_v5 = vsub.f32 1.0, %v444_v4 }
  0x24   : > { %v446_v6 = vmul.f32 %v1134_v3, %v445_v5 }
  0x26   : > { %v447_v7 = vadd.f32 %v1134_v3, %v446_v6 }
  0x28   : > { %v1363_v8 = vsel %vm448_vm1, %v1134_v3, %v447_v7 }
  0x91   : > { %v442_v9 = vpop.xlane.xlu0 %441 }
  0x92   : > { %v450_v10 = vmul.f32 %v1363_v8, %v442_v9 }
  0x94   : > { %v451_v11 = vsub.f32 %v1359_v0, %v450_v10 }
  0x96   : > { %v452_v12 = vmul.f32 %v451_v11, %v451_v11 }
  0x98   : > { %v453_v13 = vsel %vm439_vm0, %v452_v12, 0.0 }
  0x99   : > { %454 = vadd.xlane.f32.xlu0 %v453_v13 }
 0x10c   : > { %v455_v18 = vpop.xlane.xlu0 %454 }
 0x10d   : > { %v456_v19 = vmul.f32 %v455_v18, %v1363_v8 }
 0x10f   : > { %v457_v20 = vadd.f32 1e-05, %v456_v19 }
 0x111   : > { %1135 = vrsqrt.f32 %v457_v20  ;;  %vm464_vm3 = vweird.f32 %v457_v20 }
 0x117   : > { %v1136_v21 = vpop.eup %1135 }
 0x118   : > { %v459_v22 = vmul.f32 %v1136_v21, %v457_v20  ;;  %vm465_vm2 = vweird.f32 %v1136_v21 }
 0x119   : > { %vm466_vm4 = vmor %vm464_vm3, %vm465_vm2 }
 0x11a   : > { %v460_v23 = vmul.f32 %v1136_v21, %v459_v22 }
 0x11c   : > { %v461_v24 = vmul.f32 0.5, %v460_v23 }
 0x11e   : > { %v462_v25 = vsub.f32 1.5, %v461_v24 }
 0x120   : > { %v463_v26 = vmul.f32 %v1136_v21, %v462_v25 }
 0x122   : > { %v467_v28 = vsel %vm466_vm4, %v1136_v21, %v463_v26 }
 0x123   : > { %v468_v29 = vmul.f32 %v467_v28, %v451_v11 }
 0x125   : > { %v472_v31 = vmul.f32 %v1125_v27, %v468_v29 }
 0x127   : > { %v476_v32 = vadd.f32 %v1126_v30, %v472_v31  ;;  %v793_v30 = vld [vmem:[%s1561_s5 + $0x18] sm:$0xff]  ;;  %v792_v31 = vld [vmem:[%s1561_s5 + $0x10] sm:$0xff] }
 0x129   : > { %1051 = vmatmul.msk.f32.vlgmr.msra.gmra.mxu2 %vm439_vm0, %v476_v32  ;;  %v791_v32 = vld [vmem:[%s1561_s5 + $0x8] sm:$0xff] }
 0x1ac   : > { %v505_v34 = vpop.f32.mrf.mxu2 }
 0x1ad   : > { %v1391_v35 = vadd.f32 %v1127_v33, %v505_v34  ;;  %v790_v33 = vld [vmem:[%s1561_s5] sm:$0xff] }
 0x1af   : > { %510 = vrot.lane.b32.xlu1 %v1391_v35, %s1222_s23  ;;  %v508_v36 = vmul.f32 0.35355338, %v1391_v35  ;;  %s1230_s23 = smov 40  }
 0x1b1   : > { %640 = vrot.lane.b32.xlu0 %v508_v36, %s1223_s24  ;;  %575 = vrot.lane.b32.xlu2 %v508_v36, %s1224_s30  ;;  %s1231_s24 = smov 56   ;;  %s1232_s30 = smov 48  }
 0x1b7   : > { %577 = vrot.lane.b32.xlu1 %v1391_v35, %s1225_s15  ;;  %s1233_s15 = smov 8  }
 0x1b9   : > { %642 = vrot.lane.b32.xlu2 %v1391_v35, %s1226_s16  ;;  %s1234_s16 = smov 16  }
 0x1bf   : > { %707 = vrot.lane.b32.xlu1 %v1391_v35, %s1227_s20  ;;  %s1235_s20 = smov 24  }
 0x1c1   : > { %705 = vrot.lane.b32.xlu2 %v508_v36, %s1228_s21 }
 0x20b   : > { %v576_v37 = vpop.permute.xlu2 %575 }
 0x213   : > { %v643_v39 = vpop.permute.xlu2 %642 }
 0x21b   : > { %v706_v43 = vpop.permute.xlu2 %705 }
 0x221   : > { %v511_v38 = vpop.permute.xlu1 %510 }
 0x222   : > { %1052 = vmatpush.xpose.msk.msra.mxu1 %vm512_vm5, %v511_v38 }
 0x223   : > { %v641_v41 = vpop.permute.xlu0 %640 }
 0x225   : > { %1053 = vmatmul.msk.f32.vlgmr.msra.gmra.mxu1 %vm512_vm5, %v508_v36 }
 0x226   : > { %1058 = vmatpush.xpose.msk.msrb.mxu1 %vm512_vm5, %v643_v39 }
 0x229   : > { %v578_v40 = vpop.permute.xlu1 %577 }
 0x22a   : > { %1055 = vmatpush.xpose.msk.msra.mxu3 %vm512_vm5, %v578_v40 }
 0x22d   : > { %1056 = vmatmul.msk.f32.vlgmr.msra.gmra.mxu3 %vm512_vm5, %v576_v37  ;;  %1059 = vmatmul.msk.f32.vlgmr.msrb.gmra.mxu1 %vm512_vm5, %v641_v41  ;;  %v1128_v41 = vld [vmem:[%s1562_s6] ss:$0 sm:$0xff] }
 0x231   : > { %v708_v42 = vpop.permute.xlu1 %707 }
 0x232   : > { %1061 = vmatpush.xpose.msk.msra.mxu1 %vm512_vm5, %v708_v42 }
 0x235   : > { %1062 = vmatmul.msk.f32.vlgmr.msra.gmra.mxu1 %vm512_vm5, %v706_v43 }
 0x236   : > { %812 = vmatpush.msrb.mxu1 %v793_v30 }
 0x238   : > { %813 = vmatpush.msrb.mxu1 %v792_v31  ;;  %v931_v31 = vld [vmem:[%s1567_s11 + $0x10] sm:$0xff] }
 0x23a   : > { %814 = vmatpush.msrb.mxu1 %v791_v32 }
 0x23c   : > { %815 = vmatpush.msrb.mxu1 %v790_v33 }
 0x2a2   : > { %v535_v44 = vpop.f32.mrf.mxu1 }
 0x2a3   : > { %v538_v45 = vsel %vm512_vm5, %v535_v44, -inf }
 0x2a4   : > { %539 = vmax.xlane.f32.xlu1 %v538_v45 }
 0x2aa   : > { %v665_v46 = vpop.f32.mrf.mxu1 }
 0x2ab   : > { %v668_v47 = vsel %vm512_vm5, %v665_v46, -inf }
 0x2ac   : > { %669 = vmax.xlane.f32.xlu0 %v668_v47 }
 0x2b0   : > { %v600_v48 = vpop.f32.mrf.mxu3 }
 0x2b1   : > { %v603_v49 = vsel %vm512_vm5, %v600_v48, -inf }
 0x2b2   : > { %604 = vmax.xlane.f32.xlu2 %v603_v49  ;;  %v730_v50 = vpop.f32.mrf.mxu1 }
 0x2b3   : > { %v733_v51 = vsel %vm512_vm5, %v730_v50, -inf }
 0x2ba   : > { %734 = vmax.xlane.f32.xlu2 %v733_v51  ;;  %v857_v51 = vld [vmem:[%s1565_s9 + $0x18] sm:$0xff] }
 0x2bd   : > { %549 = vrot.lane.b32.xlu1 %v1391_v35, %s1229_s22  ;;  %s981_s22 = scalar_lea.hbm %s1569_s13, %s1068_s0 }
 0x2be   : > { %s985_s2 = sshll.u32 %s981_s22, 4  ;;  %s986_s2 = int_to_ptr.hbm [resolvable:$true] %s985_s2 }
 0x2bf   : > { %s1171_s3 = sshra.s32 %s986_s2, 4  ;;  %s1172_s3 = int_to_ptr.hbm [resolvable:$true] %s1171_s3 }
 0x2c0   : > { %p1178_p0 = scmp.lt.s32.totalorder %s1172_s3, %s1569_s13 }
 0x317   : > { %v540_v52 = vpop.xlane.xlu1 %539 }
 0x318   : > { %v541_v53 = vsub.f32 %v535_v44, %v540_v52  ;;  %v855_v52 = vld [vmem:[%s1565_s9 + $0x8] sm:$0xff] }
 0x31a   : > { %v542_v54 = vmul.f32 1.442695, %v541_v53  ;;  %v854_v53 = vld [vmem:[%s1565_s9] sm:$0xff] }
 0x31c   : > { %1137 = vpow2.f32 %v542_v54 }
 0x31f   : > { %v670_v55 = vpop.xlane.xlu0 %669 }
 0x320   : > { %v671_v56 = vsub.f32 %v665_v46, %v670_v55 }
 0x322   : > { %v1138_v57 = vpop.eup %1137  ;;  %v672_v58 = vmul.f32 1.442695, %v671_v56 }
 0x323   : > { %v544_v59 = vsel %vm512_vm5, %v1138_v57, 0.0 }
 0x324   : > { %1139 = vpow2.f32 %v672_v58  ;;  %545 = vadd.xlane.f32.xlu1 %v544_v59 }
 0x325   : > { %v605_v60 = vpop.xlane.xlu2 %604 }
 0x326   : > { %v606_v61 = vsub.f32 %v600_v48, %v605_v60 }
 0x328   : > { %v607_v62 = vmul.f32 1.442695, %v606_v61 }
 0x32a   : > { %v1140_v63 = vpop.eup %1139  ;;  %1141 = vpow2.f32 %v607_v62 }
 0x32b   : > { %v674_v1 = vsel %vm512_vm5, %v1140_v63, 0.0 }
 0x32c   : > { %675 = vadd.xlane.f32.xlu0 %v674_v1 }
 0x32d   : > { %v735_v2 = vpop.xlane.xlu2 %734 }
 0x32e   : > { %v736_v3 = vsub.f32 %v730_v50, %v735_v2 }
 0x32f   : > { %v550_v4 = vpop.permute.xlu1 %549 }
 0x330   : > { %v1142_v5 = vpop.eup %1141  ;;  %v737_v6 = vmul.f32 1.442695, %v736_v3  ;;  %570 = vmatpush.msrb.mxu2 %v550_v4 }
 0x331   : > { %v609_v7 = vsel %vm512_vm5, %v1142_v5, 0.0 }
 0x332   : > { %1143 = vpow2.f32 %v737_v6  ;;  %610 = vadd.xlane.f32.xlu2 %v609_v7  ;;  %v943_v6 = vld [vmem:[%s1567_s11 + $0x70] sm:$0xff]  ;;  %v942_v7 = vld [vmem:[%s1567_s11 + $0x68] sm:$0xff] }
 0x338   : > { %v1144_v9 = vpop.eup %1143 }
 0x339   : > { %v739_v10 = vsel %vm512_vm5, %v1144_v9, 0.0 }
 0x33a   : > { %740 = vadd.xlane.f32.xlu2 %v739_v10  ;;  %v941_v10 = vld [vmem:[%s1567_s11 + $0x60] sm:$0xff] }
 0x33d   : > { %744 = vrot.lane.b32.xlu1 %v1391_v35, %s1230_s23 }
 0x340   : > { %614 = vrot.lane.b32.xlu0 %v1391_v35, %s1231_s24 }
 0x352   : > { %679 = vrot.lane.b32.xlu2 %v1391_v35, %s1232_s30  ;;  %s429_s30 = sand.u32 1, %s1211_s26  }
 0x353   : > { %s971_s29 = scalar_lea.sflag [#allocation4], %s429_s30 }
 0x397   : > { %v546_v11 = vpop.xlane.xlu1 %545 }
 0x398   : > { %1145 = vrcp.f32 %v546_v11  ;;  %v940_v11 = vld [vmem:[%s1567_s11 + $0x58] sm:$0xff] }
 0x39e   : > { %v1146_v12 = vpop.eup %1145 }
 0x39f   : > { %v548_v13 = vmul.f32 %v1146_v12, %v1138_v57  ;;  %v676_v15 = vpop.xlane.xlu0 %675  ;;  %v939_v12 = vld [vmem:[%s1567_s11 + $0x50] sm:$0xff] }
 0x3a1   : > { %1054 = vmatmul.msk.f32.vlgmr.msrb.gmra.mxu2 %vm512_vm5, %v548_v13 }
 0x3a5   : > { %v611_v14 = vpop.xlane.xlu2 %610 }
 0x3a6   : > { %1147 = vrcp.f32 %v611_v14 }
 0x3a7   : > { %1149 = vrcp.f32 %v676_v15  ;;  %v938_v15 = vld [vmem:[%s1567_s11 + $0x48] sm:$0xff] }
 0x3ac   : > { %v1148_v17 = vpop.eup %1147 }
 0x3ad   : > { %v741_v16 = vpop.xlane.xlu2 %740  ;;  %v1150_v18 = vpop.eup %1149  ;;  %v613_v19 = vmul.f32 %v1148_v17, %v1142_v5  ;;  %v944_v5 = vld [vmem:[%s1567_s11 + $0x78] sm:$0xff]  ;;  %v937_v17 = vld [vmem:[%s1567_s11 + $0x40] sm:$0xff] }
 0x3ae   : > { %1151 = vrcp.f32 %v741_v16  ;;  %v678_v23 = vmul.f32 %v1150_v18, %v1140_v63  ;;  %v1129_v63 = vld [vmem:[%s1563_s7] ss:$0 sm:$0xff]  ;;  %948 = vmatpush.msra.mxu0 %v944_v5 }
 0x3af   : > { %v745_v21 = vpop.permute.xlu1 %744 }
 0x3b0   : > { %949 = vmatpush.msra.mxu0 %v943_v6 }
 0x3b2   : > { %v615_v20 = vpop.permute.xlu0 %614  ;;  %950 = vmatpush.msra.mxu0 %v942_v7 }
 0x3b3   : > { %635 = vmatpush.msra.mxu2 %v615_v20 }
 0x3b4   : > { %1057 = vmatmul.msk.f32.vlgmr.msra.gmra.mxu2 %vm512_vm5, %v613_v19  ;;  %v1152_v24 = vpop.eup %1151  ;;  %951 = vmatpush.msra.mxu0 %v941_v10  ;;  %v936_v19 = vld [vmem:[%s1567_s11 + $0x38] sm:$0xff] }
 0x3b5   : > { %765 = vmatpush.msrb.mxu2 %v745_v21  ;;  %v680_v22 = vpop.permute.xlu2 %679  ;;  %v743_v25 = vmul.f32 %v1152_v24, %v1144_v9  ;;  %v1131_v9 = vld [vmem:[%s1566_s10] ss:$0 sm:$0xff]  ;;  %v935_v21 = vld [vmem:[%s1567_s11 + $0x30] sm:$0xff] }
 0x3b6   : > { %700 = vmatpush.msrb.mxu3 %v680_v22  ;;  %952 = vmatpush.msra.mxu0 %v940_v11 }
 0x3b7   : > { %1060 = vmatmul.msk.f32.vlgmr.msrb.gmra.mxu3 %vm512_vm5, %v678_v23  ;;  %v934_v23 = vld [vmem:[%s1567_s11 + $0x28] sm:$0xff] }
 0x3b8   : > { %876 = vmatpush.msra.mxu3 %v857_v51  ;;  %953 = vmatpush.msra.mxu0 %v939_v12 }
 0x3ba   : > { %954 = vmatpush.msra.mxu0 %v938_v15 }
 0x3bc   : > { %1063 = vmatmul.msk.f32.vlgmr.msrb.gmra.mxu2 %vm512_vm5, %v743_v25  ;;  %955 = vmatpush.msra.mxu0 %v937_v17 }
 0x3be   : > { %956 = vmatpush.msra.mxu0 %v936_v19 }
 0x3c0   : > { %957 = vmatpush.msra.mxu0 %v935_v21 }
 0x3c2   : > { %958 = vmatpush.msra.mxu0 %v934_v23 }
 0x424   : > { %v572_v26 = vpop.f32.mrf.mxu2 }
 0x437   : > { %v637_v27 = vpop.f32.mrf.mxu2 }
 0x438   : > { %771 = vrot.lane.b32.xlu0 %v637_v27, %s1233_s15  ;;  %s1049_s15 = sshll.u32 %s429_s30, 3 }
 0x439   : > { %s431_s23 = scalar_lea.vmem [#allocation3], %s1049_s15  ;;  %s1177_s15 = scalar_lea.hbm %s1569_s13, 16 }
 0x43a   : > { %v702_v28 = vpop.f32.mrf.mxu3  ;;  %s983_s24 = sshll.u32 %s431_s23, 4  ;;  %s984_s24 = int_to_ptr.vmem [resolvable:$true] %s983_s24 }
 0x43b   : > { %775 = vrot.lane.b32.xlu1 %v702_v28, %s1234_s16  ;;  %s1173_s16 = scalar_lea.hbm %s1172_s3, 8 }
 0x43c   : > { %p1174_p11 = scmp.ne.s32.totalorder %s1172_s3, %s1173_s16  ;;  %p1179_p1 = scmp.lt.s32.totalorder %s1177_s15, %s1173_s16 }
 0x43e   : > { %p1175_p12 = pnand %p1174_p11, %p1344_p5  ;;  %p1180_p2 = por %p1179_p1, %p1178_p0 }
 0x43f   : > { %v767_v29 = vpop.f32.mrf.mxu2 }
 0x440   : > { %779 = vrot.lane.b32.xlu2 %v767_v29, %s1235_s20  ;;  %v932_v29 = vld [vmem:[%s1567_s11 + $0x18] sm:$0xff]  ;;  %p1176_p13 = pneg %p1175_p12 }
 0x442   : > { %p1181_p3 = pnand %p1180_p2, %p1176_p13 }
 0x49a   : > { %v780_v37 = vpop.permute.xlu2 %779 }
 0x4aa   : > { %v772_v34 = vpop.permute.xlu0 %771 }
 0x4ab   : > { %v782_v35 = vsel %vm512_vm5, %v572_v26, %v772_v34  ;;  %v933_v26 = vld [vmem:[%s1567_s11 + $0x20] sm:$0xff]  ;;  %v930_v34 = vld [vmem:[%s1567_s11 + $0x8] sm:$0xff] }
 0x4ac   : > { %959 = vmatpush.msra.mxu0 %v933_v26 }
 0x4ad   : > { %v776_v36 = vpop.permute.xlu1 %775 }
 0x4ae   : > { %v784_v38 = vsel %vm783_vm6, %v782_v35, %v776_v36  ;;  %960 = vmatpush.msra.mxu0 %v932_v29  ;;  %v929_v36 = vld [vmem:[%s1567_s11] sm:$0xff] }
 0x4af   : > { %v786_v39 = vsel %vm785_vm7, %v784_v38, %v780_v37 }
 0x4b0   : > { %787 = vst.msk [vmem:[#allocation2] sm:$0xff] %vm439_vm0, %v786_v39  ;;  %961 = vmatpush.msra.mxu0 %v931_v31 }
 0x4b2   : > { %962 = vmatpush.msra.mxu0 %v930_v34 }
 0x4b4   : > { %963 = vmatpush.msra.mxu0 %v929_v36 }
 0x4b7   : > { %v788_v40 = vld [vmem:[#allocation2] sm:$0xff] }
 0x4b8   : > { %1064 = vmatmul.msk.f32.vlgmr.msrb.gmra.mxu1 %vm439_vm0, %v788_v40 }
 0x535   : > { %v817_v42 = vpop.f32.mrf.mxu1 }
 0x536   : > { %v818_v43 = vadd.f32 %v1128_v41, %v817_v42 }
 0x538   : > { %v1441_v44 = vadd.f32 %v818_v43, %v1359_v0  ;;  %v856_v0 = vld [vmem:[%s1565_s9 + $0x10] sm:$0xff] }
 0x539   : > { %877 = vmatpush.msra.mxu3 %v856_v0 }
 0x53a   : > { %v823_v45 = vsel %vm439_vm0, %v1441_v44, 0.0 }
 0x53b   : > { %824 = vadd.xlane.f32.xlu0 %v823_v45  ;;  %878 = vmatpush.msra.mxu3 %v855_v52 }
 0x53d   : > { %879 = vmatpush.msra.mxu3 %v854_v53 }
 0x5ae   : > { %v825_v46 = vpop.xlane.xlu0 %824 }
 0x5af   : > { %v826_v47 = vmul.f32 %v825_v46, %v1363_v8 }
 0x5b1   : > { %v827_v48 = vsub.f32 %v1441_v44, %v826_v47 }
 0x5b3   : > { %v828_v49 = vmul.f32 %v827_v48, %v827_v48 }
 0x5b5   : > { %v829_v50 = vsel %vm439_vm0, %v828_v49, 0.0 }
 0x5b6   : > { %830 = vadd.xlane.f32.xlu1 %v829_v50 }
 0x629   : > { %v831_v54 = vpop.xlane.xlu1 %830 }
 0x62a   : > { %v832_v55 = vmul.f32 %v831_v54, %v1363_v8  ;;  %v1130_v8 = vld [vmem:[%s1564_s8] ss:$0 sm:$0xff] }
 0x62c   : > { %v833_v56 = vadd.f32 1e-05, %v832_v55 }
 0x62e   : > { %1153 = vrsqrt.f32 %v833_v56  ;;  %vm840_vm9 = vweird.f32 %v833_v56 }
 0x634   : > { %v1154_v57 = vpop.eup %1153 }
 0x635   : > { %v835_v58 = vmul.f32 %v1154_v57, %v833_v56  ;;  %vm841_vm8 = vweird.f32 %v1154_v57 }
 0x636   : > { %vm842_vm10 = vmor %vm840_vm9, %vm841_vm8 }
 0x637   : > { %v836_v59 = vmul.f32 %v1154_v57, %v835_v58 }
 0x639   : > { %v837_v60 = vmul.f32 0.5, %v836_v59 }
 0x63b   : > { %v838_v61 = vsub.f32 1.5, %v837_v60 }
 0x63d   : > { %v839_v62 = vmul.f32 %v1154_v57, %v838_v61 }
 0x63f   : > { %v843_v1 = vsel %vm842_vm10, %v1154_v57, %v839_v62 }
 0x640   : > { %v844_v2 = vmul.f32 %v843_v1, %v827_v48  ;;  %v1132_v1 = vld [vmem:[%s1568_s12] ss:$0 sm:$0xff] }
 0x642   : > { %v848_v3 = vmul.f32 %v1129_v63, %v844_v2 }
 0x644   : > { %v852_v4 = vadd.f32 %v1130_v8, %v848_v3 }
 0x646   : > { %1065 = vmatmul.msk.f32.vlgmr.msra.gmra.mxu3 %vm439_vm0, %v852_v4 }
 0x6c9   : > { %v881_v13 = vpop.f32.mrf.mxu3 }
 0x6ca   : > { %v882_v14 = vadd.f32 %v1131_v9, %v881_v13 }
 0x6cc   : > { %v885_v16 = vmul.f32 0.70710677, %v882_v14  ;;  %v884_v61 = vmul.f32 0.5, %v882_v14 }
 0x6ce   : > { %v886_v18 = vmul.f32 %v885_v16, %v885_v16 }
 0x6d0   : > { %v887_v20 = vmin.f32 %v886_v18, 16.0 }
 0x6d2   : > { %v888_v22 = vmul.f32 2.1237322e-06, %v887_v20  ;;  %v899_v24 = vmul.f32 3.8918573e-05, %v887_v20 }
 0x6d4   : > { %v889_v25 = vadd.f32 0.00028619796, %v888_v22  ;;  %v900_v27 = vadd.f32 0.001143296, %v899_v24 }
 0x6d6   : > { %v890_v28 = vmul.f32 %v889_v25, %v887_v20  ;;  %v901_v30 = vmul.f32 %v900_v27, %v887_v20 }
 0x6d8   : > { %v902_v32 = vadd.f32 0.014752088, %v901_v30  ;;  %v891_v33 = vadd.f32 0.0036580483, %v890_v28 }
 0x6da   : > { %v903_v35 = vmul.f32 %v902_v32, %v887_v20  ;;  %v892_v38 = vmul.f32 %v891_v33, %v887_v20 }
 0x6dc   : > { %v904_v37 = vadd.f32 0.112945676, %v903_v35  ;;  %v893_v41 = vadd.f32 0.05243302, %v892_v38 }
 0x6de   : > { %v905_v39 = vmul.f32 %v904_v37, %v887_v20  ;;  %v894_v45 = vmul.f32 %v893_v41, %v887_v20 }
 0x6e0   : > { %v906_v40 = vadd.f32 0.4994258, %v905_v39  ;;  %v895_v46 = vadd.f32 0.18741608, %v894_v45 }
 0x6e2   : > { %v907_v42 = vmul.f32 %v906_v40, %v887_v20  ;;  %v896_v48 = vmul.f32 %v895_v46, %v887_v20 }
 0x6e4   : > { %v908_v43 = vadd.f32 1.0, %v907_v42  ;;  %v897_v0 = vadd.f32 1.1283791, %v896_v48 }
 0x6e6   : > { %1155 = vrcp.f32 %v908_v43  ;;  %v920_v51 = vand.u32 2147483648, %v908_v43  ;;  %v918_v53 = vand.u32 2147483647, %v908_v43  ;;  %vm914_vm12 = vweird.f32 %v908_v43 }
 0x6e7   : > { %v898_v56 = vmul.f32 %v897_v0, %v885_v16 }
 0x6e8   : > { %v921_v55 = vor.u32 1.1754944e-38, %v920_v51  ;;  %vm919_vm14 = vcmp.eq.f32.partialorder %v918_v53, 8.507059e+37 }
 0x6ec   : > { %v1156_v47 = vpop.eup %1155 }
 0x6ed   : > { %v910_v49 = vmul.f32 %v1156_v47, %v908_v43  ;;  %vm915_vm11 = vweird.f32 %v1156_v47 }
 0x6ee   : > { %vm916_vm13 = vmor %vm914_vm12, %vm915_vm11 }
 0x6ef   : > { %v911_v50 = vsub.f32 1.0, %v910_v49 }
 0x6f1   : > { %v912_v52 = vmul.f32 %v1156_v47, %v911_v50 }
 0x6f3   : > { %v913_v54 = vadd.f32 %v1156_v47, %v912_v52 }
 0x6f5   : > { %v917_v57 = vsel %vm916_vm13, %v1156_v47, %v913_v54 }
 0x6f6   : > { %v922_v58 = vsel %vm919_vm14, %v921_v55, %v917_v57 }
 0x6f7   : > { %v923_v59 = vmul.f32 %v922_v58, %v898_v56 }
 0x6f9   : > { %v1066_v60 = vclamps-f32 %v923_v59, 1.0 }
 0x6fb   : > { %v926_v62 = vadd.f32 1.0, %v1066_v60 }
 0x6fd   : > { %v927_v63 = vmul.f32 %v926_v62, %v884_v61 }
 0x6ff   : > { %964 = vmatmul.f32.vlgmr.msra.gmra.mxu0 %v927_v63 }
 0x77c   : > { %v965_v2 = vpop.f32.mrf.mxu0 }
 0x77d   : > { %v966_v8 = vadd.f32 %v1132_v1, %v965_v2 }
 0x77f   : > { %v968_v3 = vadd.f32 %v966_v8, %v1441_v44 }
 0x781   : > { %969 = vst.msk [vmem:[%s431_s23] sm:$0xff] %vm439_vm0, %v968_v3 }
 0x782   : > { %1184 = shalt.err (!%p1181_p3)
}
 0x783   : > { %1071 = dma.vmem_to_hbm [thread:$0]  (%p1344_p5), %s984_s24, 128, %s986_s2, %s971_s29  }
 0x784 PF: > { %p1077_p4 = scmp.ge.s32.totalorder %s1219_s28, 2  ;;  %s997_s30 = sand.u32 1, %s1207_s25  }
 0x785   : > { %s998_s22 = scalar_lea.sflag [#allocation4], %s997_s30 }
 0x786   : > { %p1074_p7 = pnand %p1077_p4, %p1348_p6 }
 0x788   : > { %p1075_p8 = pneg %p1074_p7 }
 0x78a   : > { %1202 = dma.done.wait (%p1075_p8), %s998_s22, 128  }
 0x78b   : > { %1204 = vsyncadd (%p1075_p8), %s998_s22, 4294967168  ;;  %p23_p9 = scmp.ge.s32.totalorder %s1331_s14, 4   ;;  %s1580_s25 = smov %s1211_s26 }
 0x78c   : > { %s1581_s26 = smov %s1215_s27  ;;  %s1582_s27 = smov %s1342_s17 }
 0x78d   : > { %s1583_s28 = smov %s1331_s14  ;;  %25 = sbr.rel (!%p23_p9) target bundleno = 8 (0x8), region = 107 }
 0x792   :  { %1004 = vsyncpa [#allocation4], 1 }
 0x793   :  { %1006 = vsyncpa [#allocation4 + $0x1], 1 }

// kernel: tpu_custom_call.1
= control target key start
LH: loop header
LB: loop body
LE: loop exit
PB: predicated region body
PF: predicated region fallthrough
CT: control target
= control target key end

     0   :  { %s1556_s0 = inlined_call_operand.vmem [shape: f32[2,8,32], index: 0, kind: input, shape index: {}]   ;;  %s1557_s1 = inlined_call_operand.vmem [shape: f32[1,32], index: 1, kind: input, shape index: {}]   ;;  %s1558_s2 = inlined_call_operand.vmem [shape: f32[1,32], index: 2, kind: input, shape index: {}]   ;;  %s1559_s3 = inlined_call_operand.vmem [shape: f32[32,96], index: 3, kind: input, shape index: {}]   ;;  %s1560_s4 = inlined_call_operand.vmem [shape: f32[1,96], index: 4, kind: input, shape index: {}]   ;;  %s1561_s5 = inlined_call_operand.vmem [shape: f32[32,32], index: 5, kind: input, shape index: {}]   ;;  %s1562_s6 = inlined_call_operand.vmem [shape: f32[1,32], index: 6, kind: input, shape index: {}]   ;;  %s1563_s7 = inlined_call_operand.vmem [shape: f32[1,32], index: 7, kind: input, shape index: {}]   ;;  %s1564_s8 = inlined_call_operand.vmem [shape: f32[1,32], index: 8, kind: input, shape index: {}]   ;;  %s1565_s9 = inlined_call_operand.vmem [shape: f32[32,128], index: 9, kind: input, shape index: {}]   ;;  %s1566_s10 = inlined_call_operand.vmem [shape: f32[1,128], index: 10, kind: input, shape index: {}]   ;;  %s1567_s11 = inlined_call_operand.vmem [shape: f32[128,32], index: 11, kind: input, shape index: {}]   ;;  %s1568_s12 = inlined_call_operand.vmem [shape: f32[1,32], index: 12, kind: input, shape index: {}]   ;;  %s1569_s13 = inlined_call_operand.hbm [shape: f32[2,8,32], index: 13, kind: output, shape index: {}]  }
   0x1   :  { %1570 = sst [smem:[#allocation6_spill]] %s1556_s0 }
   0x2   :  { %1571 = sst [smem:[#allocation7_spill]] %s1557_s1 }
   0x3   :  { %1572 = sst [smem:[#allocation8_spill]] %s1558_s2 }
   0x4   :  { %1573 = sst [smem:[#allocation9_spill]] %s1559_s3 }
   0x5   :  { %18 = vsyncpa [#allocation4], 0 }
   0x6   :  { %20 = vsyncpa [#allocation4 + $0x1], 0  ;;  %s1306_s25 = smov 0   ;;  %s1308_s26 = smov 0  }
   0x7   :  { %s1310_s27 = smov 0   ;;  %s1312_s28 = smov 0  }
   0x8 LB: > { %s1327_s29 = sadd.s32 4294967295, %s1219_s28   ;;  %s1045_s30 = sadd.s32 4294967294, %s1219_s28   ;;  %s1219_s28 = sphi %s1312_s28, %s1583_s28   ;;  %s1215_s27 = sphi %s1310_s27, %s1582_s27   ;;  %s1211_s26 = sphi %s1308_s26, %s1581_s26   ;;  %s1207_s25 = sphi %s1306_s25, %s1580_s25  }
   0x9   : > { %s1331_s14 = sadd.s32 1, %s1219_s28   ;;  %s311_s15 = sadd.s32 1, %s1215_s27 }
   0xa   : > { %s308_s16 = ssub.s32 %s1219_s28, %s1331_s14  ;;  %p321_p0 = scmp.ne.s32.totalorder %s1215_s27, %s1211_s26 }
   0xb   : > { %p309_p1 = scmp.eq.s32.totalorder %s308_s16, 0  ;;  %p322_p2 = scmp.eq.s32.totalorder %s1327_s29, 1 }
   0xc   : > { %p327_p3 = scmp.ne.s32.totalorder %s1211_s26, %s1207_s25  ;;  %p328_p4 = scmp.eq.s32.totalorder %s1045_s30, 1 }
   0xd   : > { %s1342_s17 = scalar_select %p309_p1, %s1215_s27, %s311_s15  }
   0xe   : > { %p1344_p5 = por %p322_p2, %p321_p0  ;;  %p1348_p6 = por %p328_p4, %p327_p3 }
   0xf   : > { %p1048_p7 = scmp.ge.s32.totalorder %s1219_s28, 1  ;;  %p389_p8 = scmp.lt.s32.totalorder %s1219_s28, 3 }
  0x11   : > { %p390_p9 = pnand %p1048_p7, %p389_p8 }
  0x12   : > { %p432_p10 = scmp.lt.s32.totalorder (!%p390_p9), %s1327_s29, 1  ;;  %s1576_s0 = sld [smem:[#allocation6_spill]] (!%p390_p9) }
  0x13   : > { %393 = sbr.rel (%p390_p9) target bundleno = 1924 (0x784), region = 72  ;;  %s1577_s3 = sld [smem:[#allocation9_spill]] (!%p390_p9) }
  0x14   : > { %s1578_s1 = sld [smem:[#allocation7_spill]] (!%p390_p9)  ;;  %s1222_s23 = smov (!%p390_p9), 96  }
  0x15   : > { %s1579_s2 = sld [smem:[#allocation8_spill]] (!%p390_p9)  ;;  %s1224_s30 = smov (!%p390_p9), 120  }
  0x16   : > { %s1225_s15 = smov (!%p390_p9), 88   ;;  %s1226_s16 = smov (!%p390_p9), 80  }
  0x17   : > { %s1229_s22 = smov (!%p390_p9), 64  }
  0x18   : > { %s433_s20 = scalar_select %p432_p10, %s1327_s29, 1  ;;  %vm439_vm0 = vcmask 261120   ;;  %v1221_v2 = vmov 32.0   ;;  %v1127_v33 = vld [vmem:[%s1560_s4] ss:$0 sm:$0xff]  ;;  %vm512_vm5 = vcmask 64512  }
  0x19   : > { %1133 = vrcp.f32 %v1221_v2  ;;  %v481_v14 = vld [vmem:[%s1577_s3 + $0x18] sm:$0xff]  ;;  %v480_v15 = vld [vmem:[%s1577_s3 + $0x10] sm:$0xff]  ;;  %v479_v16 = vld [vmem:[%s1577_s3 + $0x8] sm:$0xff]  ;;  %vm783_vm6 = vcmask 130048   ;;  %vm785_vm7 = vcmask 195584  }
  0x1a   : > { %s1050_s21 = sshll.u32 %s433_s20, 3  ;;  %500 = vmatpush.msra.mxu2 %v481_v14  ;;  %v478_v17 = vld [vmem:[%s1577_s3] sm:$0xff]  ;;  %s1227_s20 = smov 72  }
  0x1b   : > { %s435_s24 = scalar_lea.vmem %s1576_s0, %s1050_s21  ;;  %v1125_v27 = vld [vmem:[%s1578_s1] ss:$0 sm:$0xff]  ;;  %s1228_s21 = smov 104  }
  0x1c   : > { %v1359_v0 = vld [vmem:[%s435_s24] sm:$0xff]  ;;  %501 = vmatpush.msra.mxu2 %v480_v15  ;;  %s1223_s24 = smov 112   ;;  %s1068_s0 = sshll.u32 %s1327_s29, 3 }
  0x1d   : > { %v440_v1 = vsel %vm439_vm0, %v1359_v0, 0.0  ;;  %v1126_v30 = vld [vmem:[%s1579_s2] ss:$0 sm:$0xff] }
  0x1e   : > { %441 = vadd.xlane.f32.xlu0 %v440_v1  ;;  %502 = vmatpush.msra.mxu2 %v479_v16 }
  0x1f   : > { %v1134_v3 = vpop.eup %1133 }
  0x20   : > { %v444_v4 = vmul.f32 32.0, %v1134_v3  ;;  %vm448_vm1 = vweird.f32 %v1134_v3  ;;  %503 = vmatpush.msra.mxu2 %v478_v17 }
  0x22   : > { %v445_v5 = vsub.f32 1.0, %v444_v4 }
  0x24   : > { %v446_v6 = vmul.f32 %v1134_v3, %v445_v5 }
  0x26   : > { %v447_v7 = vadd.f32 %v1134_v3, %v446_v6 }
  0x28   : > { %v1363_v8 = vsel %vm448_vm1, %v1134_v3, %v447_v7 }
  0x91   : > { %v442_v9 = vpop.xlane.xlu0 %441 }
  0x92   : > { %v450_v10 = vmul.f32 %v1363_v8, %v442_v9 }
  0x94   : > { %v451_v11 = vsub.f32 %v1359_v0, %v450_v10 }
  0x96   : > { %v452_v12 = vmul.f32 %v451_v11, %v451_v11 }
  0x98   : > { %v453_v13 = vsel %vm439_vm0, %v452_v12, 0.0 }
  0x99   : > { %454 = vadd.xlane.f32.xlu0 %v453_v13 }
 0x10c   : > { %v455_v18 = vpop.xlane.xlu0 %454 }
 0x10d   : > { %v456_v19 = vmul.f32 %v455_v18, %v1363_v8 }
 0x10f   : > { %v457_v20 = vadd.f32 1e-05, %v456_v19 }
 0x111   : > { %1135 = vrsqrt.f32 %v457_v20  ;;  %vm464_vm3 = vweird.f32 %v457_v20 }
 0x117   : > { %v1136_v21 = vpop.eup %1135 }
 0x118   : > { %v459_v22 = vmul.f32 %v1136_v21, %v457_v20  ;;  %vm465_vm2 = vweird.f32 %v1136_v21 }
 0x119   : > { %vm466_vm4 = vmor %vm464_vm3, %vm465_vm2 }
 0x11a   : > { %v460_v23 = vmul.f32 %v1136_v21, %v459_v22 }
 0x11c   : > { %v461_v24 = vmul.f32 0.5, %v460_v23 }
 0x11e   : > { %v462_v25 = vsub.f32 1.5, %v461_v24 }
 0x120   : > { %v463_v26 = vmul.f32 %v1136_v21, %v462_v25 }
 0x122   : > { %v467_v28 = vsel %vm466_vm4, %v1136_v21, %v463_v26 }
 0x123   : > { %v468_v29 = vmul.f32 %v467_v28, %v451_v11 }
 0x125   : > { %v472_v31 = vmul.f32 %v1125_v27, %v468_v29 }
 0x127   : > { %v476_v32 = vadd.f32 %v1126_v30, %v472_v31  ;;  %v793_v30 = vld [vmem:[%s1561_s5 + $0x18] sm:$0xff]  ;;  %v792_v31 = vld [vmem:[%s1561_s5 + $0x10] sm:$0xff] }
 0x129   : > { %1051 = vmatmul.msk.f32.vlgmr.msra.gmra.mxu2 %vm439_vm0, %v476_v32  ;;  %v791_v32 = vld [vmem:[%s1561_s5 + $0x8] sm:$0xff] }
 0x1ac   : > { %v505_v34 = vpop.f32.mrf.mxu2 }
 0x1ad   : > { %v1391_v35 = vadd.f32 %v1127_v33, %v505_v34  ;;  %v790_v33 = vld [vmem:[%s1561_s5] sm:$0xff] }
 0x1af   : > { %510 = vrot.lane.b32.xlu1 %v1391_v35, %s1222_s23  ;;  %v508_v36 = vmul.f32 0.35355338, %v1391_v35  ;;  %s1230_s23 = smov 40  }
 0x1b1   : > { %640 = vrot.lane.b32.xlu0 %v508_v36, %s1223_s24  ;;  %575 = vrot.lane.b32.xlu2 %v508_v36, %s1224_s30  ;;  %s1231_s24 = smov 56   ;;  %s1232_s30 = smov 48  }
 0x1b7   : > { %577 = vrot.lane.b32.xlu1 %v1391_v35, %s1225_s15  ;;  %s1233_s15 = smov 8  }
 0x1b9   : > { %642 = vrot.lane.b32.xlu2 %v1391_v35, %s1226_s16  ;;  %s1234_s16 = smov 16  }
 0x1bf   : > { %707 = vrot.lane.b32.xlu1 %v1391_v35, %s1227_s20  ;;  %s1235_s20 = smov 24  }
 0x1c1   : > { %705 = vrot.lane.b32.xlu2 %v508_v36, %s1228_s21 }
 0x20b   : > { %v576_v37 = vpop.permute.xlu2 %575 }
 0x213   : > { %v643_v39 = vpop.permute.xlu2 %642 }
 0x21b   : > { %v706_v43 = vpop.permute.xlu2 %705 }
 0x221   : > { %v511_v38 = vpop.permute.xlu1 %510 }
 0x222   : > { %1052 = vmatpush.xpose.msk.msra.mxu1 %vm512_vm5, %v511_v38 }
 0x223   : > { %v641_v41 = vpop.permute.xlu0 %640 }
 0x225   : > { %1053 = vmatmul.msk.f32.vlgmr.msra.gmra.mxu1 %vm512_vm5, %v508_v36 }
 0x226   : > { %1058 = vmatpush.xpose.msk.msrb.mxu1 %vm512_vm5, %v643_v39 }
 0x229   : > { %v578_v40 = vpop.permute.xlu1 %577 }
 0x22a   : > { %1055 = vmatpush.xpose.msk.msra.mxu3 %vm512_vm5, %v578_v40 }
 0x22d   : > { %1056 = vmatmul.msk.f32.vlgmr.msra.gmra.mxu3 %vm512_vm5, %v576_v37  ;;  %1059 = vmatmul.msk.f32.vlgmr.msrb.gmra.mxu1 %vm512_vm5, %v641_v41  ;;  %v1128_v41 = vld [vmem:[%s1562_s6] ss:$0 sm:$0xff] }
 0x231   : > { %v708_v42 = vpop.permute.xlu1 %707 }
 0x232   : > { %1061 = vmatpush.xpose.msk.msra.mxu1 %vm512_vm5, %v708_v42 }
 0x235   : > { %1062 = vmatmul.msk.f32.vlgmr.msra.gmra.mxu1 %vm512_vm5, %v706_v43 }
 0x236   : > { %812 = vmatpush.msrb.mxu1 %v793_v30 }
 0x238   : > { %813 = vmatpush.msrb.mxu1 %v792_v31  ;;  %v931_v31 = vld [vmem:[%s1567_s11 + $0x10] sm:$0xff] }
 0x23a   : > { %814 = vmatpush.msrb.mxu1 %v791_v32 }
 0x23c   : > { %815 = vmatpush.msrb.mxu1 %v790_v33 }
 0x2a2   : > { %v535_v44 = vpop.f32.mrf.mxu1 }
 0x2a3   : > { %v538_v45 = vsel %vm512_vm5, %v535_v44, -inf }
 0x2a4   : > { %539 = vmax.xlane.f32.xlu1 %v538_v45 }
 0x2aa   : > { %v665_v46 = vpop.f32.mrf.mxu1 }
 0x2ab   : > { %v668_v47 = vsel %vm512_vm5, %v665_v46, -inf }
 0x2ac   : > { %669 = vmax.xlane.f32.xlu0 %v668_v47 }
 0x2b0   : > { %v600_v48 = vpop.f32.mrf.mxu3 }
 0x2b1   : > { %v603_v49 = vsel %vm512_vm5, %v600_v48, -inf }
 0x2b2   : > { %604 = vmax.xlane.f32.xlu2 %v603_v49  ;;  %v730_v50 = vpop.f32.mrf.mxu1 }
 0x2b3   : > { %v733_v51 = vsel %vm512_vm5, %v730_v50, -inf }
 0x2ba   : > { %734 = vmax.xlane.f32.xlu2 %v733_v51  ;;  %v857_v51 = vld [vmem:[%s1565_s9 + $0x18] sm:$0xff] }
 0x2bd   : > { %549 = vrot.lane.b32.xlu1 %v1391_v35, %s1229_s22  ;;  %s981_s22 = scalar_lea.hbm %s1569_s13, %s1068_s0 }
 0x2be   : > { %s985_s2 = sshll.u32 %s981_s22, 4  ;;  %s986_s2 = int_to_ptr.hbm [resolvable:$true] %s985_s2 }
 0x2bf   : > { %s1171_s3 = sshra.s32 %s986_s2, 4  ;;  %s1172_s3 = int_to_ptr.hbm [resolvable:$true] %s1171_s3 }
 0x2c0   : > { %p1178_p0 = scmp.lt.s32.totalorder %s1172_s3, %s1569_s13 }
 0x317   : > { %v540_v52 = vpop.xlane.xlu1 %539 }
 0x318   : > { %v541_v53 = vsub.f32 %v535_v44, %v540_v52  ;;  %v855_v52 = vld [vmem:[%s1565_s9 + $0x8] sm:$0xff] }
 0x31a   : > { %v542_v54 = vmul.f32 1.442695, %v541_v53  ;;  %v854_v53 = vld [vmem:[%s1565_s9] sm:$0xff] }
 0x31c   : > { %1137 = vpow2.f32 %v542_v54 }
 0x31f   : > { %v670_v55 = vpop.xlane.xlu0 %669 }
 0x320   : > { %v671_v56 = vsub.f32 %v665_v46, %v670_v55 }
 0x322   : > { %v1138_v57 = vpop.eup %1137  ;;  %v672_v58 = vmul.f32 1.442695, %v671_v56 }
 0x323   : > { %v544_v59 = vsel %vm512_vm5, %v1138_v57, 0.0 }
 0x324   : > { %1139 = vpow2.f32 %v672_v58  ;;  %545 = vadd.xlane.f32.xlu1 %v544_v59 }
 0x325   : > { %v605_v60 = vpop.xlane.xlu2 %604 }
 0x326   : > { %v606_v61 = vsub.f32 %v600_v48, %v605_v60 }
 0x328   : > { %v607_v62 = vmul.f32 1.442695, %v606_v61 }
 0x32a   : > { %v1140_v63 = vpop.eup %1139  ;;  %1141 = vpow2.f32 %v607_v62 }
 0x32b   : > { %v674_v1 = vsel %vm512_vm5, %v1140_v63, 0.0 }
 0x32c   : > { %675 = vadd.xlane.f32.xlu0 %v674_v1 }
 0x32d   : > { %v735_v2 = vpop.xlane.xlu2 %734 }
 0x32e   : > { %v736_v3 = vsub.f32 %v730_v50, %v735_v2 }
 0x32f   : > { %v550_v4 = vpop.permute.xlu1 %549 }
 0x330   : > { %v1142_v5 = vpop.eup %1141  ;;  %v737_v6 = vmul.f32 1.442695, %v736_v3  ;;  %570 = vmatpush.msrb.mxu2 %v550_v4 }
 0x331   : > { %v609_v7 = vsel %vm512_vm5, %v1142_v5, 0.0 }
 0x332   : > { %1143 = vpow2.f32 %v737_v6  ;;  %610 = vadd.xlane.f32.xlu2 %v609_v7  ;;  %v943_v6 = vld [vmem:[%s1567_s11 + $0x70] sm:$0xff]  ;;  %v942_v7 = vld [vmem:[%s1567_s11 + $0x68] sm:$0xff] }
 0x338   : > { %v1144_v9 = vpop.eup %1143 }
 0x339   : > { %v739_v10 = vsel %vm512_vm5, %v1144_v9, 0.0 }
 0x33a   : > { %740 = vadd.xlane.f32.xlu2 %v739_v10  ;;  %v941_v10 = vld [vmem:[%s1567_s11 + $0x60] sm:$0xff] }
 0x33d   : > { %744 = vrot.lane.b32.xlu1 %v1391_v35, %s1230_s23 }
 0x340   : > { %614 = vrot.lane.b32.xlu0 %v1391_v35, %s1231_s24 }
 0x352   : > { %679 = vrot.lane.b32.xlu2 %v1391_v35, %s1232_s30  ;;  %s429_s30 = sand.u32 1, %s1211_s26  }
 0x353   : > { %s971_s29 = scalar_lea.sflag [#allocation4], %s429_s30 }
 0x397   : > { %v546_v11 = vpop.xlane.xlu1 %545 }
 0x398   : > { %1145 = vrcp.f32 %v546_v11  ;;  %v940_v11 = vld [vmem:[%s1567_s11 + $0x58] sm:$0xff] }
 0x39e   : > { %v1146_v12 = vpop.eup %1145 }
 0x39f   : > { %v548_v13 = vmul.f32 %v1146_v12, %v1138_v57  ;;  %v676_v15 = vpop.xlane.xlu0 %675  ;;  %v939_v12 = vld [vmem:[%s1567_s11 + $0x50] sm:$0xff] }
 0x3a1   : > { %1054 = vmatmul.msk.f32.vlgmr.msrb.gmra.mxu2 %vm512_vm5, %v548_v13 }
 0x3a5   : > { %v611_v14 = vpop.xlane.xlu2 %610 }
 0x3a6   : > { %1147 = vrcp.f32 %v611_v14 }
 0x3a7   : > { %1149 = vrcp.f32 %v676_v15  ;;  %v938_v15 = vld [vmem:[%s1567_s11 + $0x48] sm:$0xff] }
 0x3ac   : > { %v1148_v17 = vpop.eup %1147 }
 0x3ad   : > { %v741_v16 = vpop.xlane.xlu2 %740  ;;  %v1150_v18 = vpop.eup %1149  ;;  %v613_v19 = vmul.f32 %v1148_v17, %v1142_v5  ;;  %v944_v5 = vld [vmem:[%s1567_s11 + $0x78] sm:$0xff]  ;;  %v937_v17 = vld [vmem:[%s1567_s11 + $0x40] sm:$0xff] }
 0x3ae   : > { %1151 = vrcp.f32 %v741_v16  ;;  %v678_v23 = vmul.f32 %v1150_v18, %v1140_v63  ;;  %v1129_v63 = vld [vmem:[%s1563_s7] ss:$0 sm:$0xff]  ;;  %948 = vmatpush.msra.mxu0 %v944_v5 }
 0x3af   : > { %v745_v21 = vpop.permute.xlu1 %744 }
 0x3b0   : > { %949 = vmatpush.msra.mxu0 %v943_v6 }
 0x3b2   : > { %v615_v20 = vpop.permute.xlu0 %614  ;;  %950 = vmatpush.msra.mxu0 %v942_v7 }
 0x3b3   : > { %635 = vmatpush.msra.mxu2 %v615_v20 }
 0x3b4   : > { %1057 = vmatmul.msk.f32.vlgmr.msra.gmra.mxu2 %vm512_vm5, %v613_v19  ;;  %v1152_v24 = vpop.eup %1151  ;;  %951 = vmatpush.msra.mxu0 %v941_v10  ;;  %v936_v19 = vld [vmem:[%s1567_s11 + $0x38] sm:$0xff] }
 0x3b5   : > { %765 = vmatpush.msrb.mxu2 %v745_v21  ;;  %v680_v22 = vpop.permute.xlu2 %679  ;;  %v743_v25 = vmul.f32 %v1152_v24, %v1144_v9  ;;  %v1131_v9 = vld [vmem:[%s1566_s10] ss:$0 sm:$0xff]  ;;  %v935_v21 = vld [vmem:[%s1567_s11 + $0x30] sm:$0xff] }
 0x3b6   : > { %700 = vmatpush.msrb.mxu3 %v680_v22  ;;  %952 = vmatpush.msra.mxu0 %v940_v11 }
 0x3b7   : > { %1060 = vmatmul.msk.f32.vlgmr.msrb.gmra.mxu3 %vm512_vm5, %v678_v23  ;;  %v934_v23 = vld [vmem:[%s1567_s11 + $0x28] sm:$0xff] }
 0x3b8   : > { %876 = vmatpush.msra.mxu3 %v857_v51  ;;  %953 = vmatpush.msra.mxu0 %v939_v12 }
 0x3ba   : > { %954 = vmatpush.msra.mxu0 %v938_v15 }
 0x3bc   : > { %1063 = vmatmul.msk.f32.vlgmr.msrb.gmra.mxu2 %vm512_vm5, %v743_v25  ;;  %955 = vmatpush.msra.mxu0 %v937_v17 }
 0x3be   : > { %956 = vmatpush.msra.mxu0 %v936_v19 }
 0x3c0   : > { %957 = vmatpush.msra.mxu0 %v935_v21 }
 0x3c2   : > { %958 = vmatpush.msra.mxu0 %v934_v23 }
 0x424   : > { %v572_v26 = vpop.f32.mrf.mxu2 }
 0x437   : > { %v637_v27 = vpop.f32.mrf.mxu2 }
 0x438   : > { %771 = vrot.lane.b32.xlu0 %v637_v27, %s1233_s15  ;;  %s1049_s15 = sshll.u32 %s429_s30, 3 }
 0x439   : > { %s431_s23 = scalar_lea.vmem [#allocation3], %s1049_s15  ;;  %s1177_s15 = scalar_lea.hbm %s1569_s13, 16 }
 0x43a   : > { %v702_v28 = vpop.f32.mrf.mxu3  ;;  %s983_s24 = sshll.u32 %s431_s23, 4  ;;  %s984_s24 = int_to_ptr.vmem [resolvable:$true] %s983_s24 }
 0x43b   : > { %775 = vrot.lane.b32.xlu1 %v702_v28, %s1234_s16  ;;  %s1173_s16 = scalar_lea.hbm %s1172_s3, 8 }
 0x43c   : > { %p1174_p11 = scmp.ne.s32.totalorder %s1172_s3, %s1173_s16  ;;  %p1179_p1 = scmp.lt.s32.totalorder %s1177_s15, %s1173_s16 }
 0x43e   : > { %p1175_p12 = pnand %p1174_p11, %p1344_p5  ;;  %p1180_p2 = por %p1179_p1, %p1178_p0 }
 0x43f   : > { %v767_v29 = vpop.f32.mrf.mxu2 }
 0x440   : > { %779 = vrot.lane.b32.xlu2 %v767_v29, %s1235_s20  ;;  %v932_v29 = vld [vmem:[%s1567_s11 + $0x18] sm:$0xff]  ;;  %p1176_p13 = pneg %p1175_p12 }
 0x442   : > { %p1181_p3 = pnand %p1180_p2, %p1176_p13 }
 0x49a   : > { %v780_v37 = vpop.permute.xlu2 %779 }
 0x4aa   : > { %v772_v34 = vpop.permute.xlu0 %771 }
 0x4ab   : > { %v782_v35 = vsel %vm512_vm5, %v572_v26, %v772_v34  ;;  %v933_v26 = vld [vmem:[%s1567_s11 + $0x20] sm:$0xff]  ;;  %v930_v34 = vld [vmem:[%s1567_s11 + $0x8] sm:$0xff] }
 0x4ac   : > { %959 = vmatpush.msra.mxu0 %v933_v26 }
 0x4ad   : > { %v776_v36 = vpop.permute.xlu1 %775 }
 0x4ae   : > { %v784_v38 = vsel %vm783_vm6, %v782_v35, %v776_v36  ;;  %960 = vmatpush.msra.mxu0 %v932_v29  ;;  %v929_v36 = vld [vmem:[%s1567_s11] sm:$0xff] }
 0x4af   : > { %v786_v39 = vsel %vm785_vm7, %v784_v38, %v780_v37 }
 0x4b0   : > { %787 = vst.msk [vmem:[#allocation2] sm:$0xff] %vm439_vm0, %v786_v39  ;;  %961 = vmatpush.msra.mxu0 %v931_v31 }
 0x4b2   : > { %962 = vmatpush.msra.mxu0 %v930_v34 }
 0x4b4   : > { %963 = vmatpush.msra.mxu0 %v929_v36 }
 0x4b7   : > { %v788_v40 = vld [vmem:[#allocation2] sm:$0xff] }
 0x4b8   : > { %1064 = vmatmul.msk.f32.vlgmr.msrb.gmra.mxu1 %vm439_vm0, %v788_v40 }
 0x535   : > { %v817_v42 = vpop.f32.mrf.mxu1 }
 0x536   : > { %v818_v43 = vadd.f32 %v1128_v41, %v817_v42 }
 0x538   : > { %v1441_v44 = vadd.f32 %v818_v43, %v1359_v0  ;;  %v856_v0 = vld [vmem:[%s1565_s9 + $0x10] sm:$0xff] }
 0x539   : > { %877 = vmatpush.msra.mxu3 %v856_v0 }
 0x53a   : > { %v823_v45 = vsel %vm439_vm0, %v1441_v44, 0.0 }
 0x53b   : > { %824 = vadd.xlane.f32.xlu0 %v823_v45  ;;  %878 = vmatpush.msra.mxu3 %v855_v52 }
 0x53d   : > { %879 = vmatpush.msra.mxu3 %v854_v53 }
 0x5ae   : > { %v825_v46 = vpop.xlane.xlu0 %824 }
 0x5af   : > { %v826_v47 = vmul.f32 %v825_v46, %v1363_v8 }
 0x5b1   : > { %v827_v48 = vsub.f32 %v1441_v44, %v826_v47 }
 0x5b3   : > { %v828_v49 = vmul.f32 %v827_v48, %v827_v48 }
 0x5b5   : > { %v829_v50 = vsel %vm439_vm0, %v828_v49, 0.0 }
 0x5b6   : > { %830 = vadd.xlane.f32.xlu1 %v829_v50 }
 0x629   : > { %v831_v54 = vpop.xlane.xlu1 %830 }
 0x62a   : > { %v832_v55 = vmul.f32 %v831_v54, %v1363_v8  ;;  %v1130_v8 = vld [vmem:[%s1564_s8] ss:$0 sm:$0xff] }
 0x62c   : > { %v833_v56 = vadd.f32 1e-05, %v832_v55 }
 0x62e   : > { %1153 = vrsqrt.f32 %v833_v56  ;;  %vm840_vm9 = vweird.f32 %v833_v56 }
 0x634   : > { %v1154_v57 = vpop.eup %1153 }
 0x635   : > { %v835_v58 = vmul.f32 %v1154_v57, %v833_v56  ;;  %vm841_vm8 = vweird.f32 %v1154_v57 }
 0x636   : > { %vm842_vm10 = vmor %vm840_vm9, %vm841_vm8 }
 0x637   : > { %v836_v59 = vmul.f32 %v1154_v57, %v835_v58 }
 0x639   : > { %v837_v60 = vmul.f32 0.5, %v836_v59 }
 0x63b   : > { %v838_v61 = vsub.f32 1.5, %v837_v60 }
 0x63d   : > { %v839_v62 = vmul.f32 %v1154_v57, %v838_v61 }
 0x63f   : > { %v843_v1 = vsel %vm842_vm10, %v1154_v57, %v839_v62 }
 0x640   : > { %v844_v2 = vmul.f32 %v843_v1, %v827_v48  ;;  %v1132_v1 = vld [vmem:[%s1568_s12] ss:$0 sm:$0xff] }
 0x642   : > { %v848_v3 = vmul.f32 %v1129_v63, %v844_v2 }
 0x644   : > { %v852_v4 = vadd.f32 %v1130_v8, %v848_v3 }
 0x646   : > { %1065 = vmatmul.msk.f32.vlgmr.msra.gmra.mxu3 %vm439_vm0, %v852_v4 }
 0x6c9   : > { %v881_v13 = vpop.f32.mrf.mxu3 }
 0x6ca   : > { %v882_v14 = vadd.f32 %v1131_v9, %v881_v13 }
 0x6cc   : > { %v885_v16 = vmul.f32 0.70710677, %v882_v14  ;;  %v884_v61 = vmul.f32 0.5, %v882_v14 }
 0x6ce   : > { %v886_v18 = vmul.f32 %v885_v16, %v885_v16 }
 0x6d0   : > { %v887_v20 = vmin.f32 %v886_v18, 16.0 }
 0x6d2   : > { %v888_v22 = vmul.f32 2.1237322e-06, %v887_v20  ;;  %v899_v24 = vmul.f32 3.8918573e-05, %v887_v20 }
 0x6d4   : > { %v889_v25 = vadd.f32 0.00028619796, %v888_v22  ;;  %v900_v27 = vadd.f32 0.001143296, %v899_v24 }
 0x6d6   : > { %v890_v28 = vmul.f32 %v889_v25, %v887_v20  ;;  %v901_v30 = vmul.f32 %v900_v27, %v887_v20 }
 0x6d8   : > { %v902_v32 = vadd.f32 0.014752088, %v901_v30  ;;  %v891_v33 = vadd.f32 0.0036580483, %v890_v28 }
 0x6da   : > { %v903_v35 = vmul.f32 %v902_v32, %v887_v20  ;;  %v892_v38 = vmul.f32 %v891_v33, %v887_v20 }
 0x6dc   : > { %v904_v37 = vadd.f32 0.112945676, %v903_v35  ;;  %v893_v41 = vadd.f32 0.05243302, %v892_v38 }
 0x6de   : > { %v905_v39 = vmul.f32 %v904_v37, %v887_v20  ;;  %v894_v45 = vmul.f32 %v893_v41, %v887_v20 }
 0x6e0   : > { %v906_v40 = vadd.f32 0.4994258, %v905_v39  ;;  %v895_v46 = vadd.f32 0.18741608, %v894_v45 }
 0x6e2   : > { %v907_v42 = vmul.f32 %v906_v40, %v887_v20  ;;  %v896_v48 = vmul.f32 %v895_v46, %v887_v20 }
 0x6e4   : > { %v908_v43 = vadd.f32 1.0, %v907_v42  ;;  %v897_v0 = vadd.f32 1.1283791, %v896_v48 }
 0x6e6   : > { %1155 = vrcp.f32 %v908_v43  ;;  %v920_v51 = vand.u32 2147483648, %v908_v43  ;;  %v918_v53 = vand.u32 2147483647, %v908_v43  ;;  %vm914_vm12 = vweird.f32 %v908_v43 }
 0x6e7   : > { %v898_v56 = vmul.f32 %v897_v0, %v885_v16 }
 0x6e8   : > { %v921_v55 = vor.u32 1.1754944e-38, %v920_v51  ;;  %vm919_vm14 = vcmp.eq.f32.partialorder %v918_v53, 8.507059e+37 }
 0x6ec   : > { %v1156_v47 = vpop.eup %1155 }
 0x6ed   : > { %v910_v49 = vmul.f32 %v1156_v47, %v908_v43  ;;  %vm915_vm11 = vweird.f32 %v1156_v47 }
 0x6ee   : > { %vm916_vm13 = vmor %vm914_vm12, %vm915_vm11 }
 0x6ef   : > { %v911_v50 = vsub.f32 1.0, %v910_v49 }
 0x6f1   : > { %v912_v52 = vmul.f32 %v1156_v47, %v911_v50 }
 0x6f3   : > { %v913_v54 = vadd.f32 %v1156_v47, %v912_v52 }
 0x6f5   : > { %v917_v57 = vsel %vm916_vm13, %v1156_v47, %v913_v54 }
 0x6f6   : > { %v922_v58 = vsel %vm919_vm14, %v921_v55, %v917_v57 }
 0x6f7   : > { %v923_v59 = vmul.f32 %v922_v58, %v898_v56 }
 0x6f9   : > { %v1066_v60 = vclamps-f32 %v923_v59, 1.0 }
 0x6fb   : > { %v926_v62 = vadd.f32 1.0, %v1066_v60 }
 0x6fd   : > { %v927_v63 = vmul.f32 %v926_v62, %v884_v61 }
 0x6ff   : > { %964 = vmatmul.f32.vlgmr.msra.gmra.mxu0 %v927_v63 }
 0x77c   : > { %v965_v2 = vpop.f32.mrf.mxu0 }
 0x77d   : > { %v966_v8 = vadd.f32 %v1132_v1, %v965_v2 }
 0x77f   : > { %v968_v3 = vadd.f32 %v966_v8, %v1441_v44 }
 0x781   : > { %969 = vst.msk [vmem:[%s431_s23] sm:$0xff] %vm439_vm0, %v968_v3 }
 0x782   : > { %1184 = shalt.err (!%p1181_p3)
}
 0x783   : > { %1071 = dma.vmem_to_hbm [thread:$0]  (%p1344_p5), %s984_s24, 128, %s986_s2, %s971_s29  }
 0x784 PF: > { %p1077_p4 = scmp.ge.s32.totalorder %s1219_s28, 2  ;;  %s997_s30 = sand.u32 1, %s1207_s25  }
 0x785   : > { %s998_s22 = scalar_lea.sflag [#allocation4], %s997_s30 }
 0x786   : > { %p1074_p7 = pnand %p1077_p4, %p1348_p6 }
 0x788   : > { %p1075_p8 = pneg %p1074_p7 }
 0x78a   : > { %1202 = dma.done.wait (%p1075_p8), %s998_s22, 128  }
 0x78b   : > { %1204 = vsyncadd (%p1075_p8), %s998_s22, 4294967168  ;;  %p23_p9 = scmp.ge.s32.totalorder %s1331_s14, 4   ;;  %s1580_s25 = smov %s1211_s26 }
 0x78c   : > { %s1581_s26 = smov %s1215_s27  ;;  %s1582_s27 = smov %s1342_s17 }
 0x78d   : > { %s1583_s28 = smov %s1331_s14  ;;  %25 = sbr.rel (!%p23_p9) target bundleno = 8 (0x8), region = 107 }
 0x792   :  { %1004 = vsyncpa [#allocation4], 1 }
 0x793   :  { %1006 = vsyncpa [#allocation4 + $0x1], 1 }

</bundles_post_ra>
